<compile_context>
chip_gen: v7x
topology: tpu7x:2x2x1
jax: 0.10.0
libtpu: 0.0.40
codegen_flags: <defaults>
</compile_context>

<pallas_src>
import functools

import jax
import jax.numpy as jnp
from jax import lax
from jax.experimental import pallas as pl
from jax.experimental.pallas import tpu as pltpu


def _round_up(a, b):
    return (a + b - 1) // b * b


def _conv_rows_kernel(xv_ref, w_ref, o_ref, *, Q, R, W_out):
    """One grid step computes `th` complete output rows.

    xv_ref: [Q, th, C_in, Wv]   bf16  -- Q row-shifted views of the padded input
    w_ref:  [Q, R, C_out, C_in] bf16  -- kernel taps, w_ref[q, r] = ker[:, :, kh, kw]
    o_ref:  [th, C_out, W_out]  f32
    """
    th = xv_ref.shape[1]
    C_out = o_ref.shape[1]

    # Tiny weight taps: load once, reuse across every row of the tile.
    w_taps = [[w_ref[q, r] for r in range(R)] for q in range(Q)]

    for t in range(th):                               # static unroll over tile rows
        acc = jnp.zeros((C_out, W_out), jnp.float32)
        for q in range(Q):
            x_qt = xv_ref[q, t]                       # [C_in, Wv] contiguous tile load
            for r in range(R):
                # Unit-stride window along W (in-VMEM im2col), MXU matmul,
                # f32 accumulation.
                acc = acc + jnp.dot(w_taps[q][r], x_qt[:, r:r + W_out],
                                    preferred_element_type=jnp.float32)
        o_ref[t] = acc


def conv2d_forward(x, kernel, padding=0, stride=1):
    """Replicates Conv2d.forward (cross-correlation, no bias) of the PyTorch module.

    x:      [C_in, H, W]          (single image, CHW)
    kernel: [C_out, C_in, KH, KW]
    returns [C_out, H_out, W_out] float32
    """
    x = jnp.asarray(x)
    kernel = jnp.asarray(kernel)
    C_in, H, W = x.shape
    C_out, C_in_k, KH, KW = kernel.shape
    assert C_in == C_in_k
    p, s = int(padding), int(stride)

    # bf16 operands (MXU-native), f32 accumulation inside the kernel.
    xb = x.astype(jnp.bfloat16)
    kb = kernel.astype(jnp.bfloat16)

    # ZeroPad2d (layout glue, plain JAX).
    xp = jnp.pad(xb, ((0, 0), (p, p), (p, p)))
    Hp, Wp = H + 2 * p, W + 2 * p
    H_out = (Hp - KH) // s + 1
    W_out = (Wp - KW) // s + 1

    # Stage the input as Q row-shifted (and, for stride>1, column-strided) views,
    # laid out [Q, H_out, C_in, Wv].  For stride 1 this is only KH x the input
    # (NOT the KH*KW x of a materialized im2col); the KW window extraction happens
    # inside the kernel on VMEM-resident data.
    xpt = jnp.transpose(xp, (1, 0, 2))                # [Hp, C_in, Wp]
    if s == 1:
        Q, R, Wv = KH, KW, Wp
        views = [xpt[kh:kh + H_out] for kh in range(KH)]
        wv = jnp.transpose(kb, (2, 3, 0, 1))          # [KH, KW, C_out, C_in]
    else:
        Q, R, Wv = KH * KW, 1, W_out
        views = [xpt[kh:kh + s * (H_out - 1) + 1:s, :,
                     kw:kw + s * (W_out - 1) + 1:s]
                 for kh in range(KH) for kw in range(KW)]
        wv = jnp.transpose(kb, (2, 3, 0, 1)).reshape(KH * KW, 1, C_out, C_in)
    xv = jnp.stack(views, axis=0)                     # [Q, H_out, C_in, Wv]

    # Row-tile size: multiple of 8 (sublane rule), sized against a VMEM budget,
    # capped so even small problems exercise a multi-step (pipelined) grid.
    def tile_bytes(t):
        # double-buffered input tile + double-buffered output tile
        return 2 * (Q * t * C_in * Wv * 2) + 2 * (t * C_out * W_out * 4)

    H8 = _round_up(H_out, 8)
    max_th = min(32, (H8 // 2) // 8 * 8) if H8 >= 16 else 8
    max_th = max(max_th, 8)
    th = 8
    while th + 8 <= max_th and tile_bytes(th + 8) <= (8 << 20):
        th += 8
    H_out_pad = _round_up(H_out, th)
    grid_m = H_out_pad // th

    if H_out_pad != H_out:
        xv = jnp.pad(xv, ((0, 0), (0, H_out_pad - H_out), (0, 0), (0, 0)))

    # Explicit VMEM budget (safe on v7x's 64 MiB physical VMEM as well).
    vmem_limit = int(min(max(32 * 1024 * 1024, 4 * tile_bytes(th)),
                         48 * 1024 * 1024))

    kern = functools.partial(_conv_rows_kernel, Q=Q, R=R, W_out=W_out)
    out_rows = pl.pallas_call(
        kern,
        out_shape=jax.ShapeDtypeStruct((H_out_pad, C_out, W_out), jnp.float32),
        grid=(grid_m,),
        in_specs=[
            pl.BlockSpec((Q, th, C_in, Wv), lambda i: (0, i, 0, 0)),
            pl.BlockSpec((Q, R, C_out, C_in), lambda i: (0, 0, 0, 0)),
        ],
        out_specs=pl.BlockSpec((th, C_out, W_out), lambda i: (i, 0, 0)),
        compiler_params=pltpu.CompilerParams(
            dimension_semantics=("parallel",),
            vmem_limit_bytes=vmem_limit),
    )(xv, wv)

    # [H_out, C_out, W_out] -> [C_out, H_out, W_out]; drop padded rows.
    return jnp.transpose(out_rows[:H_out], (1, 0, 2))


if __name__ == "__main__":
    key = jax.random.PRNGKey(0)
    kx, kk = jax.random.split(key)

    # Small shapes consistent with the module's forward (single CHW image).
    C_in, H, W = 4, 16, 16
    C_out, KH, KW = 8, 3, 3
    padding, stride = 1, 1

    x = jax.random.normal(kx, (C_in, H, W), dtype=jnp.float32)
    kernel = jax.random.normal(kk, (C_out, C_in, KH, KW), dtype=jnp.float32)

    out = conv2d_forward(x, kernel, padding=padding, stride=stride)
    out = jax.block_until_ready(out)

    H_out = (H + 2 * padding - KH) // stride + 1
    W_out = (W + 2 * padding - KW) // stride + 1
    assert out.shape == (C_out, H_out, W_out)
    assert out.dtype == jnp.float32

    # Tight check: reference on the same bf16-rounded operands (the kernel
    # multiplies bf16 operands exactly and accumulates in f32).
    xbf = x.astype(jnp.bfloat16).astype(jnp.float32)
    kbf = kernel.astype(jnp.bfloat16).astype(jnp.float32)
    ref_bf = lax.conv_general_dilated(
        xbf[None], kbf, window_strides=(stride, stride),
        padding=[(padding, padding), (padding, padding)],
        dimension_numbers=("NCHW", "OIHW", "NCHW"),
        precision=lax.Precision.HIGHEST)[0]
    assert jnp.allclose(out, ref_bf, atol=2e-3, rtol=2e-3), \
        float(jnp.max(jnp.abs(out - ref_bf)))

    # Loose sanity check vs. the full-f32 reference (bf16 operand rounding only).
    ref_f32 = lax.conv_general_dilated(
        x[None], kernel, window_strides=(stride, stride),
        padding=[(padding, padding), (padding, padding)],
        dimension_numbers=("NCHW", "OIHW", "NCHW"),
        precision=lax.Precision.HIGHEST)[0]
    assert jnp.allclose(out, ref_f32, atol=2e-1, rtol=2e-1)

    print("KERNEL_OK")
</pallas_src>

<mosaic_0001>
module attributes {stable_mosaic.version = 11 : i64} {
  func.func @_conv_rows_kernel(%arg0: i32, %arg1: memref<3x8x4x18xbf16, #tpu.memory_space<vmem>>, %arg2: memref<3x3x8x4xbf16, #tpu.memory_space<vmem>>, %arg3: memref<8x8x16xf32, #tpu.memory_space<vmem>>) attributes {dimension_semantics = [#tpu.dimension_semantics<parallel>], iteration_bounds = array<i64: 2>, scalar_prefetch = 0 : i64, scratch_operands = 0 : i64, tpu.core_type = #tpu.core_type<tc>, window_params = [{transform_indices = @transform_0, window_bounds = array<i64: 3, 8, 4, 18>}, {pipeline_mode = #tpu.pipeline_mode<synchronous>, transform_indices = @transform_1, window_bounds = array<i64: 3, 3, 8, 4>}, {transform_indices = @transform_2, window_bounds = array<i64: 8, 8, 16>}]} {
    %c0 = arith.constant 0 : index
    %c0_0 = arith.constant 0 : index
    %c0_1 = arith.constant 0 : index
    %c0_2 = arith.constant 0 : index
    %0 = vector.load %arg2[%c0, %c0_0, %c0_1, %c0_2] : memref<3x3x8x4xbf16, #tpu.memory_space<vmem>>, vector<1x1x8x4xbf16>
    %1 = vector.shape_cast %0 : vector<1x1x8x4xbf16> to vector<8x4xbf16>
    %c0_3 = arith.constant 0 : index
    %c1 = arith.constant 1 : index
    %c0_4 = arith.constant 0 : index
    %c0_5 = arith.constant 0 : index
    %2 = vector.load %arg2[%c0_3, %c1, %c0_4, %c0_5] : memref<3x3x8x4xbf16, #tpu.memory_space<vmem>>, vector<1x1x8x4xbf16>
    %3 = vector.shape_cast %2 : vector<1x1x8x4xbf16> to vector<8x4xbf16>
    %c0_6 = arith.constant 0 : index
    %c2 = arith.constant 2 : index
    %c0_7 = arith.constant 0 : index
    %c0_8 = arith.constant 0 : index
    %4 = vector.load %arg2[%c0_6, %c2, %c0_7, %c0_8] : memref<3x3x8x4xbf16, #tpu.memory_space<vmem>>, vector<1x1x8x4xbf16>
    %5 = vector.shape_cast %4 : vector<1x1x8x4xbf16> to vector<8x4xbf16>
    %c1_9 = arith.constant 1 : index
    %c0_10 = arith.constant 0 : index
    %c0_11 = arith.constant 0 : index
    %c0_12 = arith.constant 0 : index
    %6 = vector.load %arg2[%c1_9, %c0_10, %c0_11, %c0_12] : memref<3x3x8x4xbf16, #tpu.memory_space<vmem>>, vector<1x1x8x4xbf16>
    %7 = vector.shape_cast %6 : vector<1x1x8x4xbf16> to vector<8x4xbf16>
    %c1_13 = arith.constant 1 : index
    %c1_14 = arith.constant 1 : index
    %c0_15 = arith.constant 0 : index
    %c0_16 = arith.constant 0 : index
    %8 = vector.load %arg2[%c1_13, %c1_14, %c0_15, %c0_16] : memref<3x3x8x4xbf16, #tpu.memory_space<vmem>>, vector<1x1x8x4xbf16>
    %9 = vector.shape_cast %8 : vector<1x1x8x4xbf16> to vector<8x4xbf16>
    %c1_17 = arith.constant 1 : index
    %c2_18 = arith.constant 2 : index
    %c0_19 = arith.constant 0 : index
    %c0_20 = arith.constant 0 : index
    %10 = vector.load %arg2[%c1_17, %c2_18, %c0_19, %c0_20] : memref<3x3x8x4xbf16, #tpu.memory_space<vmem>>, vector<1x1x8x4xbf16>
    %11 = vector.shape_cast %10 : vector<1x1x8x4xbf16> to vector<8x4xbf16>
    %c2_21 = arith.constant 2 : index
    %c0_22 = arith.constant 0 : index
    %c0_23 = arith.constant 0 : index
    %c0_24 = arith.constant 0 : index
    %12 = vector.load %arg2[%c2_21, %c0_22, %c0_23, %c0_24] : memref<3x3x8x4xbf16, #tpu.memory_space<vmem>>, vector<1x1x8x4xbf16>
    %13 = vector.shape_cast %12 : vector<1x1x8x4xbf16> to vector<8x4xbf16>
    %c2_25 = arith.constant 2 : index
    %c1_26 = arith.constant 1 : index
    %c0_27 = arith.constant 0 : index
    %c0_28 = arith.constant 0 : index
    %14 = vector.load %arg2[%c2_25, %c1_26, %c0_27, %c0_28] : memref<3x3x8x4xbf16, #tpu.memory_space<vmem>>, vector<1x1x8x4xbf16>
    %15 = vector.shape_cast %14 : vector<1x1x8x4xbf16> to vector<8x4xbf16>
    %c2_29 = arith.constant 2 : index
    %c2_30 = arith.constant 2 : index
    %c0_31 = arith.constant 0 : index
    %c0_32 = arith.constant 0 : index
    %16 = vector.load %arg2[%c2_29, %c2_30, %c0_31, %c0_32] : memref<3x3x8x4xbf16, #tpu.memory_space<vmem>>, vector<1x1x8x4xbf16>
    %17 = vector.shape_cast %16 : vector<1x1x8x4xbf16> to vector<8x4xbf16>
    %cst = arith.constant 0.000000e+00 : f32
    %18 = vector.broadcast %cst : f32 to vector<8x16xf32>
    %c0_33 = arith.constant 0 : index
    %c0_34 = arith.constant 0 : index
    %c0_35 = arith.constant 0 : index
    %c0_36 = arith.constant 0 : index
    %19 = vector.load %arg1[%c0_33, %c0_34, %c0_35, %c0_36] : memref<3x8x4x18xbf16, #tpu.memory_space<vmem>>, vector<1x1x4x18xbf16>
    %20 = vector.shape_cast %19 : vector<1x1x4x18xbf16> to vector<4x18xbf16>
    %21 = vector.extract_strided_slice %20 {offsets = [0, 0], sizes = [4, 16], strides = [1, 1]} : vector<4x18xbf16> to vector<4x16xbf16>
    %cst_37 = arith.constant dense<0.000000e+00> : vector<8x16xf32>
    %22 = tpu.matmul %1, %21, %cst_37 {dimension_numbers = #tpu.dot_dimension_numbers<[1], [0], [0], [1], [0, 0, 1, 1], [], []>} : vector<8x4xbf16>, vector<4x16xbf16>, vector<8x16xf32> -> vector<8x16xf32>
    %23 = arith.addf %18, %22 : vector<8x16xf32>
    %24 = vector.extract_strided_slice %20 {offsets = [0, 1], sizes = [4, 16], strides = [1, 1]} : vector<4x18xbf16> to vector<4x16xbf16>
    %cst_38 = arith.constant dense<0.000000e+00> : vector<8x16xf32>
    %25 = tpu.matmul %3, %24, %cst_38 {dimension_numbers = #tpu.dot_dimension_numbers<[1], [0], [0], [1], [0, 0, 1, 1], [], []>} : vector<8x4xbf16>, vector<4x16xbf16>, vector<8x16xf32> -> vector<8x16xf32>
    %26 = arith.addf %23, %25 : vector<8x16xf32>
    %27 = vector.extract_strided_slice %20 {offsets = [0, 2], sizes = [4, 16], strides = [1, 1]} : vector<4x18xbf16> to vector<4x16xbf16>
    %cst_39 = arith.constant dense<0.000000e+00> : vector<8x16xf32>
    %28 = tpu.matmul %5, %27, %cst_39 {dimension_numbers = #tpu.dot_dimension_numbers<[1], [0], [0], [1], [0, 0, 1, 1], [], []>} : vector<8x4xbf16>, vector<4x16xbf16>, vector<8x16xf32> -> vector<8x16xf32>
    %29 = arith.addf %26, %28 : vector<8x16xf32>
    %c1_40 = arith.constant 1 : index
    %c0_41 = arith.constant 0 : index
    %c0_42 = arith.constant 0 : index
    %c0_43 = arith.constant 0 : index
    %30 = vector.load %arg1[%c1_40, %c0_41, %c0_42, %c0_43] : memref<3x8x4x18xbf16, #tpu.memory_space<vmem>>, vector<1x1x4x18xbf16>
    %31 = vector.shape_cast %30 : vector<1x1x4x18xbf16> to vector<4x18xbf16>
    %32 = vector.extract_strided_slice %31 {offsets = [0, 0], sizes = [4, 16], strides = [1, 1]} : vector<4x18xbf16> to vector<4x16xbf16>
    %cst_44 = arith.constant dense<0.000000e+00> : vector<8x16xf32>
    %33 = tpu.matmul %7, %32, %cst_44 {dimension_numbers = #tpu.dot_dimension_numbers<[1], [0], [0], [1], [0, 0, 1, 1], [], []>} : vector<8x4xbf16>, vector<4x16xbf16>, vector<8x16xf32> -> vector<8x16xf32>
    %34 = arith.addf %29, %33 : vector<8x16xf32>
    %35 = vector.extract_strided_slice %31 {offsets = [0, 1], sizes = [4, 16], strides = [1, 1]} : vector<4x18xbf16> to vector<4x16xbf16>
    %cst_45 = arith.constant dense<0.000000e+00> : vector<8x16xf32>
    %36 = tpu.matmul %9, %35, %cst_45 {dimension_numbers = #tpu.dot_dimension_numbers<[1], [0], [0], [1], [0, 0, 1, 1], [], []>} : vector<8x4xbf16>, vector<4x16xbf16>, vector<8x16xf32> -> vector<8x16xf32>
    %37 = arith.addf %34, %36 : vector<8x16xf32>
    %38 = vector.extract_strided_slice %31 {offsets = [0, 2], sizes = [4, 16], strides = [1, 1]} : vector<4x18xbf16> to vector<4x16xbf16>
    %cst_46 = arith.constant dense<0.000000e+00> : vector<8x16xf32>
    %39 = tpu.matmul %11, %38, %cst_46 {dimension_numbers = #tpu.dot_dimension_numbers<[1], [0], [0], [1], [0, 0, 1, 1], [], []>} : vector<8x4xbf16>, vector<4x16xbf16>, vector<8x16xf32> -> vector<8x16xf32>
    %40 = arith.addf %37, %39 : vector<8x16xf32>
    %c2_47 = arith.constant 2 : index
    %c0_48 = arith.constant 0 : index
    %c0_49 = arith.constant 0 : index
    %c0_50 = arith.constant 0 : index
    %41 = vector.load %arg1[%c2_47, %c0_48, %c0_49, %c0_50] : memref<3x8x4x18xbf16, #tpu.memory_space<vmem>>, vector<1x1x4x18xbf16>
    %42 = vector.shape_cast %41 : vector<1x1x4x18xbf16> to vector<4x18xbf16>
    %43 = vector.extract_strided_slice %42 {offsets = [0, 0], sizes = [4, 16], strides = [1, 1]} : vector<4x18xbf16> to vector<4x16xbf16>
    %cst_51 = arith.constant dense<0.000000e+00> : vector<8x16xf32>
    %44 = tpu.matmul %13, %43, %cst_51 {dimension_numbers = #tpu.dot_dimension_numbers<[1], [0], [0], [1], [0, 0, 1, 1], [], []>} : vector<8x4xbf16>, vector<4x16xbf16>, vector<8x16xf32> -> vector<8x16xf32>
    %45 = arith.addf %40, %44 : vector<8x16xf32>
    %46 = vector.extract_strided_slice %42 {offsets = [0, 1], sizes = [4, 16], strides = [1, 1]} : vector<4x18xbf16> to vector<4x16xbf16>
    %cst_52 = arith.constant dense<0.000000e+00> : vector<8x16xf32>
    %47 = tpu.matmul %15, %46, %cst_52 {dimension_numbers = #tpu.dot_dimension_numbers<[1], [0], [0], [1], [0, 0, 1, 1], [], []>} : vector<8x4xbf16>, vector<4x16xbf16>, vector<8x16xf32> -> vector<8x16xf32>
    %48 = arith.addf %45, %47 : vector<8x16xf32>
    %49 = vector.extract_strided_slice %42 {offsets = [0, 2], sizes = [4, 16], strides = [1, 1]} : vector<4x18xbf16> to vector<4x16xbf16>
    %cst_53 = arith.constant dense<0.000000e+00> : vector<8x16xf32>
    %50 = tpu.matmul %17, %49, %cst_53 {dimension_numbers = #tpu.dot_dimension_numbers<[1], [0], [0], [1], [0, 0, 1, 1], [], []>} : vector<8x4xbf16>, vector<4x16xbf16>, vector<8x16xf32> -> vector<8x16xf32>
    %51 = arith.addf %48, %50 : vector<8x16xf32>
    %c0_54 = arith.constant 0 : index
    %c0_55 = arith.constant 0 : index
    %c0_56 = arith.constant 0 : index
    %52 = vector.load %arg3[%c0_54, %c0_55, %c0_56] : memref<8x8x16xf32, #tpu.memory_space<vmem>>, vector<1x8x16xf32>
    %53 = vector.shape_cast %52 : vector<1x8x16xf32> to vector<8x16xf32>
    %54 = vector.shape_cast %51 : vector<8x16xf32> to vector<1x8x16xf32>
    tpu.vector_store %arg3[%c0_54, %c0_55, %c0_56], %54 {strides = array<i32>} : memref<8x8x16xf32, #tpu.memory_space<vmem>>, vector<1x8x16xf32>,
    %cst_57 = arith.constant 0.000000e+00 : f32
    %55 = vector.broadcast %cst_57 : f32 to vector<8x16xf32>
    %c0_58 = arith.constant 0 : index
    %c1_59 = arith.constant 1 : index
    %c0_60 = arith.constant 0 : index
    %c0_61 = arith.constant 0 : index
    %56 = vector.load %arg1[%c0_58, %c1_59, %c0_60, %c0_61] : memref<3x8x4x18xbf16, #tpu.memory_space<vmem>>, vector<1x1x4x18xbf16>
    %57 = vector.shape_cast %56 : vector<1x1x4x18xbf16> to vector<4x18xbf16>
    %58 = vector.extract_strided_slice %57 {offsets = [0, 0], sizes = [4, 16], strides = [1, 1]} : vector<4x18xbf16> to vector<4x16xbf16>
    %cst_62 = arith.constant dense<0.000000e+00> : vector<8x16xf32>
    %59 = tpu.matmul %1, %58, %cst_62 {dimension_numbers = #tpu.dot_dimension_numbers<[1], [0], [0], [1], [0, 0, 1, 1], [], []>} : vector<8x4xbf16>, vector<4x16xbf16>, vector<8x16xf32> -> vector<8x16xf32>
    %60 = arith.addf %55, %59 : vector<8x16xf32>
    %61 = vector.extract_strided_slice %57 {offsets = [0, 1], sizes = [4, 16], strides = [1, 1]} : vector<4x18xbf16> to vector<4x16xbf16>
    %cst_63 = arith.constant dense<0.000000e+00> : vector<8x16xf32>
    %62 = tpu.matmul %3, %61, %cst_63 {dimension_numbers = #tpu.dot_dimension_numbers<[1], [0], [0], [1], [0, 0, 1, 1], [], []>} : vector<8x4xbf16>, vector<4x16xbf16>, vector<8x16xf32> -> vector<8x16xf32>
    %63 = arith.addf %60, %62 : vector<8x16xf32>
    %64 = vector.extract_strided_slice %57 {offsets = [0, 2], sizes = [4, 16], strides = [1, 1]} : vector<4x18xbf16> to vector<4x16xbf16>
    %cst_64 = arith.constant dense<0.000000e+00> : vector<8x16xf32>
    %65 = tpu.matmul %5, %64, %cst_64 {dimension_numbers = #tpu.dot_dimension_numbers<[1], [0], [0], [1], [0, 0, 1, 1], [], []>} : vector<8x4xbf16>, vector<4x16xbf16>, vector<8x16xf32> -> vector<8x16xf32>
    %66 = arith.addf %63, %65 : vector<8x16xf32>
    %c1_65 = arith.constant 1 : index
    %c1_66 = arith.constant 1 : index
    %c0_67 = arith.constant 0 : index
    %c0_68 = arith.constant 0 : index
    %67 = vector.load %arg1[%c1_65, %c1_66, %c0_67, %c0_68] : memref<3x8x4x18xbf16, #tpu.memory_space<vmem>>, vector<1x1x4x18xbf16>
    %68 = vector.shape_cast %67 : vector<1x1x4x18xbf16> to vector<4x18xbf16>
    %69 = vector.extract_strided_slice %68 {offsets = [0, 0], sizes = [4, 16], strides = [1, 1]} : vector<4x18xbf16> to vector<4x16xbf16>
    %cst_69 = arith.constant dense<0.000000e+00> : vector<8x16xf32>
    %70 = tpu.matmul %7, %69, %cst_69 {dimension_numbers = #tpu.dot_dimension_numbers<[1], [0], [0], [1], [0, 0, 1, 1], [], []>} : vector<8x4xbf16>, vector<4x16xbf16>, vector<8x16xf32> -> vector<8x16xf32>
    %71 = arith.addf %66, %70 : vector<8x16xf32>
    %72 = vector.extract_strided_slice %68 {offsets = [0, 1], sizes = [4, 16], strides = [1, 1]} : vector<4x18xbf16> to vector<4x16xbf16>
    %cst_70 = arith.constant dense<0.000000e+00> : vector<8x16xf32>
    %73 = tpu.matmul %9, %72, %cst_70 {dimension_numbers = #tpu.dot_dimension_numbers<[1], [0], [0], [1], [0, 0, 1, 1], [], []>} : vector<8x4xbf16>, vector<4x16xbf16>, vector<8x16xf32> -> vector<8x16xf32>
    %74 = arith.addf %71, %73 : vector<8x16xf32>
    %75 = vector.extract_strided_slice %68 {offsets = [0, 2], sizes = [4, 16], strides = [1, 1]} : vector<4x18xbf16> to vector<4x16xbf16>
    %cst_71 = arith.constant dense<0.000000e+00> : vector<8x16xf32>
    %76 = tpu.matmul %11, %75, %cst_71 {dimension_numbers = #tpu.dot_dimension_numbers<[1], [0], [0], [1], [0, 0, 1, 1], [], []>} : vector<8x4xbf16>, vector<4x16xbf16>, vector<8x16xf32> -> vector<8x16xf32>
    %77 = arith.addf %74, %76 : vector<8x16xf32>
    %c2_72 = arith.constant 2 : index
    %c1_73 = arith.constant 1 : index
    %c0_74 = arith.constant 0 : index
    %c0_75 = arith.constant 0 : index
    %78 = vector.load %arg1[%c2_72, %c1_73, %c0_74, %c0_75] : memref<3x8x4x18xbf16, #tpu.memory_space<vmem>>, vector<1x1x4x18xbf16>
    %79 = vector.shape_cast %78 : vector<1x1x4x18xbf16> to vector<4x18xbf16>
    %80 = vector.extract_strided_slice %79 {offsets = [0, 0], sizes = [4, 16], strides = [1, 1]} : vector<4x18xbf16> to vector<4x16xbf16>
    %cst_76 = arith.constant dense<0.000000e+00> : vector<8x16xf32>
    %81 = tpu.matmul %13, %80, %cst_76 {dimension_numbers = #tpu.dot_dimension_numbers<[1], [0], [0], [1], [0, 0, 1, 1], [], []>} : vector<8x4xbf16>, vector<4x16xbf16>, vector<8x16xf32> -> vector<8x16xf32>
    %82 = arith.addf %77, %81 : vector<8x16xf32>
    %83 = vector.extract_strided_slice %79 {offsets = [0, 1], sizes = [4, 16], strides = [1, 1]} : vector<4x18xbf16> to vector<4x16xbf16>
    %cst_77 = arith.constant dense<0.000000e+00> : vector<8x16xf32>
    %84 = tpu.matmul %15, %83, %cst_77 {dimension_numbers = #tpu.dot_dimension_numbers<[1], [0], [0], [1], [0, 0, 1, 1], [], []>} : vector<8x4xbf16>, vector<4x16xbf16>, vector<8x16xf32> -> vector<8x16xf32>
    %85 = arith.addf %82, %84 : vector<8x16xf32>
    %86 = vector.extract_strided_slice %79 {offsets = [0, 2], sizes = [4, 16], strides = [1, 1]} : vector<4x18xbf16> to vector<4x16xbf16>
    %cst_78 = arith.constant dense<0.000000e+00> : vector<8x16xf32>
    %87 = tpu.matmul %17, %86, %cst_78 {dimension_numbers = #tpu.dot_dimension_numbers<[1], [0], [0], [1], [0, 0, 1, 1], [], []>} : vector<8x4xbf16>, vector<4x16xbf16>, vector<8x16xf32> -> vector<8x16xf32>
    %88 = arith.addf %85, %87 : vector<8x16xf32>
    %c1_79 = arith.constant 1 : index
    %c0_80 = arith.constant 0 : index
    %c0_81 = arith.constant 0 : index
    %89 = vector.load %arg3[%c1_79, %c0_80, %c0_81] : memref<8x8x16xf32, #tpu.memory_space<vmem>>, vector<1x8x16xf32>
    %90 = vector.shape_cast %89 : vector<1x8x16xf32> to vector<8x16xf32>
    %91 = vector.shape_cast %88 : vector<8x16xf32> to vector<1x8x16xf32>
    tpu.vector_store %arg3[%c1_79, %c0_80, %c0_81], %91 {strides = array<i32>} : memref<8x8x16xf32, #tpu.memory_space<vmem>>, vector<1x8x16xf32>,
    %cst_82 = arith.constant 0.000000e+00 : f32
    %92 = vector.broadcast %cst_82 : f32 to vector<8x16xf32>
    %c0_83 = arith.constant 0 : index
    %c2_84 = arith.constant 2 : index
    %c0_85 = arith.constant 0 : index
    %c0_86 = arith.constant 0 : index
    %93 = vector.load %arg1[%c0_83, %c2_84, %c0_85, %c0_86] : memref<3x8x4x18xbf16, #tpu.memory_space<vmem>>, vector<1x1x4x18xbf16>
    %94 = vector.shape_cast %93 : vector<1x1x4x18xbf16> to vector<4x18xbf16>
    %95 = vector.extract_strided_slice %94 {offsets = [0, 0], sizes = [4, 16], strides = [1, 1]} : vector<4x18xbf16> to vector<4x16xbf16>
    %cst_87 = arith.constant dense<0.000000e+00> : vector<8x16xf32>
    %96 = tpu.matmul %1, %95, %cst_87 {dimension_numbers = #tpu.dot_dimension_numbers<[1], [0], [0], [1], [0, 0, 1, 1], [], []>} : vector<8x4xbf16>, vector<4x16xbf16>, vector<8x16xf32> -> vector<8x16xf32>
    %97 = arith.addf %92, %96 : vector<8x16xf32>
    %98 = vector.extract_strided_slice %94 {offsets = [0, 1], sizes = [4, 16], strides = [1, 1]} : vector<4x18xbf16> to vector<4x16xbf16>
    %cst_88 = arith.constant dense<0.000000e+00> : vector<8x16xf32>
    %99 = tpu.matmul %3, %98, %cst_88 {dimension_numbers = #tpu.dot_dimension_numbers<[1], [0], [0], [1], [0, 0, 1, 1], [], []>} : vector<8x4xbf16>, vector<4x16xbf16>, vector<8x16xf32> -> vector<8x16xf32>
    %100 = arith.addf %97, %99 : vector<8x16xf32>
    %101 = vector.extract_strided_slice %94 {offsets = [0, 2], sizes = [4, 16], strides = [1, 1]} : vector<4x18xbf16> to vector<4x16xbf16>
    %cst_89 = arith.constant dense<0.000000e+00> : vector<8x16xf32>
    %102 = tpu.matmul %5, %101, %cst_89 {dimension_numbers = #tpu.dot_dimension_numbers<[1], [0], [0], [1], [0, 0, 1, 1], [], []>} : vector<8x4xbf16>, vector<4x16xbf16>, vector<8x16xf32> -> vector<8x16xf32>
    %103 = arith.addf %100, %102 : vector<8x16xf32>
    %c1_90 = arith.constant 1 : index
    %c2_91 = arith.constant 2 : index
    %c0_92 = arith.constant 0 : index
    %c0_93 = arith.constant 0 : index
    %104 = vector.load %arg1[%c1_90, %c2_91, %c0_92, %c0_93] : memref<3x8x4x18xbf16, #tpu.memory_space<vmem>>, vector<1x1x4x18xbf16>
    %105 = vector.shape_cast %104 : vector<1x1x4x18xbf16> to vector<4x18xbf16>
    %106 = vector.extract_strided_slice %105 {offsets = [0, 0], sizes = [4, 16], strides = [1, 1]} : vector<4x18xbf16> to vector<4x16xbf16>
    %cst_94 = arith.constant dense<0.000000e+00> : vector<8x16xf32>
    %107 = tpu.matmul %7, %106, %cst_94 {dimension_numbers = #tpu.dot_dimension_numbers<[1], [0], [0], [1], [0, 0, 1, 1], [], []>} : vector<8x4xbf16>, vector<4x16xbf16>, vector<8x16xf32> -> vector<8x16xf32>
    %108 = arith.addf %103, %107 : vector<8x16xf32>
    %109 = vector.extract_strided_slice %105 {offsets = [0, 1], sizes = [4, 16], strides = [1, 1]} : vector<4x18xbf16> to vector<4x16xbf16>
    %cst_95 = arith.constant dense<0.000000e+00> : vector<8x16xf32>
    %110 = tpu.matmul %9, %109, %cst_95 {dimension_numbers = #tpu.dot_dimension_numbers<[1], [0], [0], [1], [0, 0, 1, 1], [], []>} : vector<8x4xbf16>, vector<4x16xbf16>, vector<8x16xf32> -> vector<8x16xf32>
    %111 = arith.addf %108, %110 : vector<8x16xf32>
    %112 = vector.extract_strided_slice %105 {offsets = [0, 2], sizes = [4, 16], strides = [1, 1]} : vector<4x18xbf16> to vector<4x16xbf16>
    %cst_96 = arith.constant dense<0.000000e+00> : vector<8x16xf32>
    %113 = tpu.matmul %11, %112, %cst_96 {dimension_numbers = #tpu.dot_dimension_numbers<[1], [0], [0], [1], [0, 0, 1, 1], [], []>} : vector<8x4xbf16>, vector<4x16xbf16>, vector<8x16xf32> -> vector<8x16xf32>
    %114 = arith.addf %111, %113 : vector<8x16xf32>
    %c2_97 = arith.constant 2 : index
    %c2_98 = arith.constant 2 : index
    %c0_99 = arith.constant 0 : index
    %c0_100 = arith.constant 0 : index
    %115 = vector.load %arg1[%c2_97, %c2_98, %c0_99, %c0_100] : memref<3x8x4x18xbf16, #tpu.memory_space<vmem>>, vector<1x1x4x18xbf16>
    %116 = vector.shape_cast %115 : vector<1x1x4x18xbf16> to vector<4x18xbf16>
    %117 = vector.extract_strided_slice %116 {offsets = [0, 0], sizes = [4, 16], strides = [1, 1]} : vector<4x18xbf16> to vector<4x16xbf16>
    %cst_101 = arith.constant dense<0.000000e+00> : vector<8x16xf32>
    %118 = tpu.matmul %13, %117, %cst_101 {dimension_numbers = #tpu.dot_dimension_numbers<[1], [0], [0], [1], [0, 0, 1, 1], [], []>} : vector<8x4xbf16>, vector<4x16xbf16>, vector<8x16xf32> -> vector<8x16xf32>
    %119 = arith.addf %114, %118 : vector<8x16xf32>
    %120 = vector.extract_strided_slice %116 {offsets = [0, 1], sizes = [4, 16], strides = [1, 1]} : vector<4x18xbf16> to vector<4x16xbf16>
    %cst_102 = arith.constant dense<0.000000e+00> : vector<8x16xf32>
    %121 = tpu.matmul %15, %120, %cst_102 {dimension_numbers = #tpu.dot_dimension_numbers<[1], [0], [0], [1], [0, 0, 1, 1], [], []>} : vector<8x4xbf16>, vector<4x16xbf16>, vector<8x16xf32> -> vector<8x16xf32>
    %122 = arith.addf %119, %121 : vector<8x16xf32>
    %123 = vector.extract_strided_slice %116 {offsets = [0, 2], sizes = [4, 16], strides = [1, 1]} : vector<4x18xbf16> to vector<4x16xbf16>
    %cst_103 = arith.constant dense<0.000000e+00> : vector<8x16xf32>
    %124 = tpu.matmul %17, %123, %cst_103 {dimension_numbers = #tpu.dot_dimension_numbers<[1], [0], [0], [1], [0, 0, 1, 1], [], []>} : vector<8x4xbf16>, vector<4x16xbf16>, vector<8x16xf32> -> vector<8x16xf32>
    %125 = arith.addf %122, %124 : vector<8x16xf32>
    %c2_104 = arith.constant 2 : index
    %c0_105 = arith.constant 0 : index
    %c0_106 = arith.constant 0 : index
    %126 = vector.load %arg3[%c2_104, %c0_105, %c0_106] : memref<8x8x16xf32, #tpu.memory_space<vmem>>, vector<1x8x16xf32>
    %127 = vector.shape_cast %126 : vector<1x8x16xf32> to vector<8x16xf32>
    %128 = vector.shape_cast %125 : vector<8x16xf32> to vector<1x8x16xf32>
    tpu.vector_store %arg3[%c2_104, %c0_105, %c0_106], %128 {strides = array<i32>} : memref<8x8x16xf32, #tpu.memory_space<vmem>>, vector<1x8x16xf32>,
    %cst_107 = arith.constant 0.000000e+00 : f32
    %129 = vector.broadcast %cst_107 : f32 to vector<8x16xf32>
    %c0_108 = arith.constant 0 : index
    %c3 = arith.constant 3 : index
    %c0_109 = arith.constant 0 : index
    %c0_110 = arith.constant 0 : index
    %130 = vector.load %arg1[%c0_108, %c3, %c0_109, %c0_110] : memref<3x8x4x18xbf16, #tpu.memory_space<vmem>>, vector<1x1x4x18xbf16>
    %131 = vector.shape_cast %130 : vector<1x1x4x18xbf16> to vector<4x18xbf16>
    %132 = vector.extract_strided_slice %131 {offsets = [0, 0], sizes = [4, 16], strides = [1, 1]} : vector<4x18xbf16> to vector<4x16xbf16>
    %cst_111 = arith.constant dense<0.000000e+00> : vector<8x16xf32>
    %133 = tpu.matmul %1, %132, %cst_111 {dimension_numbers = #tpu.dot_dimension_numbers<[1], [0], [0], [1], [0, 0, 1, 1], [], []>} : vector<8x4xbf16>, vector<4x16xbf16>, vector<8x16xf32> -> vector<8x16xf32>
    %134 = arith.addf %129, %133 : vector<8x16xf32>
    %135 = vector.extract_strided_slice %131 {offsets = [0, 1], sizes = [4, 16], strides = [1, 1]} : vector<4x18xbf16> to vector<4x16xbf16>
    %cst_112 = arith.constant dense<0.000000e+00> : vector<8x16xf32>
    %136 = tpu.matmul %3, %135, %cst_112 {dimension_numbers = #tpu.dot_dimension_numbers<[1], [0], [0], [1], [0, 0, 1, 1], [], []>} : vector<8x4xbf16>, vector<4x16xbf16>, vector<8x16xf32> -> vector<8x16xf32>
    %137 = arith.addf %134, %136 : vector<8x16xf32>
    %138 = vector.extract_strided_slice %131 {offsets = [0, 2], sizes = [4, 16], strides = [1, 1]} : vector<4x18xbf16> to vector<4x16xbf16>
    %cst_113 = arith.constant dense<0.000000e+00> : vector<8x16xf32>
    %139 = tpu.matmul %5, %138, %cst_113 {dimension_numbers = #tpu.dot_dimension_numbers<[1], [0], [0], [1], [0, 0, 1, 1], [], []>} : vector<8x4xbf16>, vector<4x16xbf16>, vector<8x16xf32> -> vector<8x16xf32>
    %140 = arith.addf %137, %139 : vector<8x16xf32>
    %c1_114 = arith.constant 1 : index
    %c3_115 = arith.constant 3 : index
    %c0_116 = arith.constant 0 : index
    %c0_117 = arith.constant 0 : index
    %141 = vector.load %arg1[%c1_114, %c3_115, %c0_116, %c0_117] : memref<3x8x4x18xbf16, #tpu.memory_space<vmem>>, vector<1x1x4x18xbf16>
    %142 = vector.shape_cast %141 : vector<1x1x4x18xbf16> to vector<4x18xbf16>
    %143 = vector.extract_strided_slice %142 {offsets = [0, 0], sizes = [4, 16], strides = [1, 1]} : vector<4x18xbf16> to vector<4x16xbf16>
    %cst_118 = arith.constant dense<0.000000e+00> : vector<8x16xf32>
    %144 = tpu.matmul %7, %143, %cst_118 {dimension_numbers = #tpu.dot_dimension_numbers<[1], [0], [0], [1], [0, 0, 1, 1], [], []>} : vector<8x4xbf16>, vector<4x16xbf16>, vector<8x16xf32> -> vector<8x16xf32>
    %145 = arith.addf %140, %144 : vector<8x16xf32>
    %146 = vector.extract_strided_slice %142 {offsets = [0, 1], sizes = [4, 16], strides = [1, 1]} : vector<4x18xbf16> to vector<4x16xbf16>
    %cst_119 = arith.constant dense<0.000000e+00> : vector<8x16xf32>
    %147 = tpu.matmul %9, %146, %cst_119 {dimension_numbers = #tpu.dot_dimension_numbers<[1], [0], [0], [1], [0, 0, 1, 1], [], []>} : vector<8x4xbf16>, vector<4x16xbf16>, vector<8x16xf32> -> vector<8x16xf32>
    %148 = arith.addf %145, %147 : vector<8x16xf32>
    %149 = vector.extract_strided_slice %142 {offsets = [0, 2], sizes = [4, 16], strides = [1, 1]} : vector<4x18xbf16> to vector<4x16xbf16>
    %cst_120 = arith.constant dense<0.000000e+00> : vector<8x16xf32>
    %150 = tpu.matmul %11, %149, %cst_120 {dimension_numbers = #tpu.dot_dimension_numbers<[1], [0], [0], [1], [0, 0, 1, 1], [], []>} : vector<8x4xbf16>, vector<4x16xbf16>, vector<8x16xf32> -> vector<8x16xf32>
    %151 = arith.addf %148, %150 : vector<8x16xf32>
    %c2_121 = arith.constant 2 : index
    %c3_122 = arith.constant 3 : index
    %c0_123 = arith.constant 0 : index
    %c0_124 = arith.constant 0 : index
    %152 = vector.load %arg1[%c2_121, %c3_122, %c0_123, %c0_124] : memref<3x8x4x18xbf16, #tpu.memory_space<vmem>>, vector<1x1x4x18xbf16>
    %153 = vector.shape_cast %152 : vector<1x1x4x18xbf16> to vector<4x18xbf16>
    %154 = vector.extract_strided_slice %153 {offsets = [0, 0], sizes = [4, 16], strides = [1, 1]} : vector<4x18xbf16> to vector<4x16xbf16>
    %cst_125 = arith.constant dense<0.000000e+00> : vector<8x16xf32>
    %155 = tpu.matmul %13, %154, %cst_125 {dimension_numbers = #tpu.dot_dimension_numbers<[1], [0], [0], [1], [0, 0, 1, 1], [], []>} : vector<8x4xbf16>, vector<4x16xbf16>, vector<8x16xf32> -> vector<8x16xf32>
    %156 = arith.addf %151, %155 : vector<8x16xf32>
    %157 = vector.extract_strided_slice %153 {offsets = [0, 1], sizes = [4, 16], strides = [1, 1]} : vector<4x18xbf16> to vector<4x16xbf16>
    %cst_126 = arith.constant dense<0.000000e+00> : vector<8x16xf32>
    %158 = tpu.matmul %15, %157, %cst_126 {dimension_numbers = #tpu.dot_dimension_numbers<[1], [0], [0], [1], [0, 0, 1, 1], [], []>} : vector<8x4xbf16>, vector<4x16xbf16>, vector<8x16xf32> -> vector<8x16xf32>
    %159 = arith.addf %156, %158 : vector<8x16xf32>
    %160 = vector.extract_strided_slice %153 {offsets = [0, 2], sizes = [4, 16], strides = [1, 1]} : vector<4x18xbf16> to vector<4x16xbf16>
    %cst_127 = arith.constant dense<0.000000e+00> : vector<8x16xf32>
    %161 = tpu.matmul %17, %160, %cst_127 {dimension_numbers = #tpu.dot_dimension_numbers<[1], [0], [0], [1], [0, 0, 1, 1], [], []>} : vector<8x4xbf16>, vector<4x16xbf16>, vector<8x16xf32> -> vector<8x16xf32>
    %162 = arith.addf %159, %161 : vector<8x16xf32>
    %c3_128 = arith.constant 3 : index
    %c0_129 = arith.constant 0 : index
    %c0_130 = arith.constant 0 : index
    %163 = vector.load %arg3[%c3_128, %c0_129, %c0_130] : memref<8x8x16xf32, #tpu.memory_space<vmem>>, vector<1x8x16xf32>
    %164 = vector.shape_cast %163 : vector<1x8x16xf32> to vector<8x16xf32>
    %165 = vector.shape_cast %162 : vector<8x16xf32> to vector<1x8x16xf32>
    tpu.vector_store %arg3[%c3_128, %c0_129, %c0_130], %165 {strides = array<i32>} : memref<8x8x16xf32, #tpu.memory_space<vmem>>, vector<1x8x16xf32>,
    %cst_131 = arith.constant 0.000000e+00 : f32
    %166 = vector.broadcast %cst_131 : f32 to vector<8x16xf32>
    %c0_132 = arith.constant 0 : index
    %c4 = arith.constant 4 : index
    %c0_133 = arith.constant 0 : index
    %c0_134 = arith.constant 0 : index
    %167 = vector.load %arg1[%c0_132, %c4, %c0_133, %c0_134] : memref<3x8x4x18xbf16, #tpu.memory_space<vmem>>, vector<1x1x4x18xbf16>
    %168 = vector.shape_cast %167 : vector<1x1x4x18xbf16> to vector<4x18xbf16>
    %169 = vector.extract_strided_slice %168 {offsets = [0, 0], sizes = [4, 16], strides = [1, 1]} : vector<4x18xbf16> to vector<4x16xbf16>
    %cst_135 = arith.constant dense<0.000000e+00> : vector<8x16xf32>
    %170 = tpu.matmul %1, %169, %cst_135 {dimension_numbers = #tpu.dot_dimension_numbers<[1], [0], [0], [1], [0, 0, 1, 1], [], []>} : vector<8x4xbf16>, vector<4x16xbf16>, vector<8x16xf32> -> vector<8x16xf32>
    %171 = arith.addf %166, %170 : vector<8x16xf32>
    %172 = vector.extract_strided_slice %168 {offsets = [0, 1], sizes = [4, 16], strides = [1, 1]} : vector<4x18xbf16> to vector<4x16xbf16>
    %cst_136 = arith.constant dense<0.000000e+00> : vector<8x16xf32>
    %173 = tpu.matmul %3, %172, %cst_136 {dimension_numbers = #tpu.dot_dimension_numbers<[1], [0], [0], [1], [0, 0, 1, 1], [], []>} : vector<8x4xbf16>, vector<4x16xbf16>, vector<8x16xf32> -> vector<8x16xf32>
    %174 = arith.addf %171, %173 : vector<8x16xf32>
    %175 = vector.extract_strided_slice %168 {offsets = [0, 2], sizes = [4, 16], strides = [1, 1]} : vector<4x18xbf16> to vector<4x16xbf16>
    %cst_137 = arith.constant dense<0.000000e+00> : vector<8x16xf32>
    %176 = tpu.matmul %5, %175, %cst_137 {dimension_numbers = #tpu.dot_dimension_numbers<[1], [0], [0], [1], [0, 0, 1, 1], [], []>} : vector<8x4xbf16>, vector<4x16xbf16>, vector<8x16xf32> -> vector<8x16xf32>
    %177 = arith.addf %174, %176 : vector<8x16xf32>
    %c1_138 = arith.constant 1 : index
    %c4_139 = arith.constant 4 : index
    %c0_140 = arith.constant 0 : index
    %c0_141 = arith.constant 0 : index
    %178 = vector.load %arg1[%c1_138, %c4_139, %c0_140, %c0_141] : memref<3x8x4x18xbf16, #tpu.memory_space<vmem>>, vector<1x1x4x18xbf16>
    %179 = vector.shape_cast %178 : vector<1x1x4x18xbf16> to vector<4x18xbf16>
    %180 = vector.extract_strided_slice %179 {offsets = [0, 0], sizes = [4, 16], strides = [1, 1]} : vector<4x18xbf16> to vector<4x16xbf16>
    %cst_142 = arith.constant dense<0.000000e+00> : vector<8x16xf32>
    %181 = tpu.matmul %7, %180, %cst_142 {dimension_numbers = #tpu.dot_dimension_numbers<[1], [0], [0], [1], [0, 0, 1, 1], [], []>} : vector<8x4xbf16>, vector<4x16xbf16>, vector<8x16xf32> -> vector<8x16xf32>
    %182 = arith.addf %177, %181 : vector<8x16xf32>
    %183 = vector.extract_strided_slice %179 {offsets = [0, 1], sizes = [4, 16], strides = [1, 1]} : vector<4x18xbf16> to vector<4x16xbf16>
    %cst_143 = arith.constant dense<0.000000e+00> : vector<8x16xf32>
    %184 = tpu.matmul %9, %183, %cst_143 {dimension_numbers = #tpu.dot_dimension_numbers<[1], [0], [0], [1], [0, 0, 1, 1], [], []>} : vector<8x4xbf16>, vector<4x16xbf16>, vector<8x16xf32> -> vector<8x16xf32>
    %185 = arith.addf %182, %184 : vector<8x16xf32>
    %186 = vector.extract_strided_slice %179 {offsets = [0, 2], sizes = [4, 16], strides = [1, 1]} : vector<4x18xbf16> to vector<4x16xbf16>
    %cst_144 = arith.constant dense<0.000000e+00> : vector<8x16xf32>
    %187 = tpu.matmul %11, %186, %cst_144 {dimension_numbers = #tpu.dot_dimension_numbers<[1], [0], [0], [1], [0, 0, 1, 1], [], []>} : vector<8x4xbf16>, vector<4x16xbf16>, vector<8x16xf32> -> vector<8x16xf32>
    %188 = arith.addf %185, %187 : vector<8x16xf32>
    %c2_145 = arith.constant 2 : index
    %c4_146 = arith.constant 4 : index
    %c0_147 = arith.constant 0 : index
    %c0_148 = arith.constant 0 : index
    %189 = vector.load %arg1[%c2_145, %c4_146, %c0_147, %c0_148] : memref<3x8x4x18xbf16, #tpu.memory_space<vmem>>, vector<1x1x4x18xbf16>
    %190 = vector.shape_cast %189 : vector<1x1x4x18xbf16> to vector<4x18xbf16>
    %191 = vector.extract_strided_slice %190 {offsets = [0, 0], sizes = [4, 16], strides = [1, 1]} : vector<4x18xbf16> to vector<4x16xbf16>
    %cst_149 = arith.constant dense<0.000000e+00> : vector<8x16xf32>
    %192 = tpu.matmul %13, %191, %cst_149 {dimension_numbers = #tpu.dot_dimension_numbers<[1], [0], [0], [1], [0, 0, 1, 1], [], []>} : vector<8x4xbf16>, vector<4x16xbf16>, vector<8x16xf32> -> vector<8x16xf32>
    %193 = arith.addf %188, %192 : vector<8x16xf32>
    %194 = vector.extract_strided_slice %190 {offsets = [0, 1], sizes = [4, 16], strides = [1, 1]} : vector<4x18xbf16> to vector<4x16xbf16>
    %cst_150 = arith.constant dense<0.000000e+00> : vector<8x16xf32>
    %195 = tpu.matmul %15, %194, %cst_150 {dimension_numbers = #tpu.dot_dimension_numbers<[1], [0], [0], [1], [0, 0, 1, 1], [], []>} : vector<8x4xbf16>, vector<4x16xbf16>, vector<8x16xf32> -> vector<8x16xf32>
    %196 = arith.addf %193, %195 : vector<8x16xf32>
    %197 = vector.extract_strided_slice %190 {offsets = [0, 2], sizes = [4, 16], strides = [1, 1]} : vector<4x18xbf16> to vector<4x16xbf16>
    %cst_151 = arith.constant dense<0.000000e+00> : vector<8x16xf32>
    %198 = tpu.matmul %17, %197, %cst_151 {dimension_numbers = #tpu.dot_dimension_numbers<[1], [0], [0], [1], [0, 0, 1, 1], [], []>} : vector<8x4xbf16>, vector<4x16xbf16>, vector<8x16xf32> -> vector<8x16xf32>
    %199 = arith.addf %196, %198 : vector<8x16xf32>
    %c4_152 = arith.constant 4 : index
    %c0_153 = arith.constant 0 : index
    %c0_154 = arith.constant 0 : index
    %200 = vector.load %arg3[%c4_152, %c0_153, %c0_154] : memref<8x8x16xf32, #tpu.memory_space<vmem>>, vector<1x8x16xf32>
    %201 = vector.shape_cast %200 : vector<1x8x16xf32> to vector<8x16xf32>
    %202 = vector.shape_cast %199 : vector<8x16xf32> to vector<1x8x16xf32>
    tpu.vector_store %arg3[%c4_152, %c0_153, %c0_154], %202 {strides = array<i32>} : memref<8x8x16xf32, #tpu.memory_space<vmem>>, vector<1x8x16xf32>,
    %cst_155 = arith.constant 0.000000e+00 : f32
    %203 = vector.broadcast %cst_155 : f32 to vector<8x16xf32>
    %c0_156 = arith.constant 0 : index
    %c5 = arith.constant 5 : index
    %c0_157 = arith.constant 0 : index
    %c0_158 = arith.constant 0 : index
    %204 = vector.load %arg1[%c0_156, %c5, %c0_157, %c0_158] : memref<3x8x4x18xbf16, #tpu.memory_space<vmem>>, vector<1x1x4x18xbf16>
    %205 = vector.shape_cast %204 : vector<1x1x4x18xbf16> to vector<4x18xbf16>
    %206 = vector.extract_strided_slice %205 {offsets = [0, 0], sizes = [4, 16], strides = [1, 1]} : vector<4x18xbf16> to vector<4x16xbf16>
    %cst_159 = arith.constant dense<0.000000e+00> : vector<8x16xf32>
    %207 = tpu.matmul %1, %206, %cst_159 {dimension_numbers = #tpu.dot_dimension_numbers<[1], [0], [0], [1], [0, 0, 1, 1], [], []>} : vector<8x4xbf16>, vector<4x16xbf16>, vector<8x16xf32> -> vector<8x16xf32>
    %208 = arith.addf %203, %207 : vector<8x16xf32>
    %209 = vector.extract_strided_slice %205 {offsets = [0, 1], sizes = [4, 16], strides = [1, 1]} : vector<4x18xbf16> to vector<4x16xbf16>
    %cst_160 = arith.constant dense<0.000000e+00> : vector<8x16xf32>
    %210 = tpu.matmul %3, %209, %cst_160 {dimension_numbers = #tpu.dot_dimension_numbers<[1], [0], [0], [1], [0, 0, 1, 1], [], []>} : vector<8x4xbf16>, vector<4x16xbf16>, vector<8x16xf32> -> vector<8x16xf32>
    %211 = arith.addf %208, %210 : vector<8x16xf32>
    %212 = vector.extract_strided_slice %205 {offsets = [0, 2], sizes = [4, 16], strides = [1, 1]} : vector<4x18xbf16> to vector<4x16xbf16>
    %cst_161 = arith.constant dense<0.000000e+00> : vector<8x16xf32>
    %213 = tpu.matmul %5, %212, %cst_161 {dimension_numbers = #tpu.dot_dimension_numbers<[1], [0], [0], [1], [0, 0, 1, 1], [], []>} : vector<8x4xbf16>, vector<4x16xbf16>, vector<8x16xf32> -> vector<8x16xf32>
    %214 = arith.addf %211, %213 : vector<8x16xf32>
    %c1_162 = arith.constant 1 : index
    %c5_163 = arith.constant 5 : index
    %c0_164 = arith.constant 0 : index
    %c0_165 = arith.constant 0 : index
    %215 = vector.load %arg1[%c1_162, %c5_163, %c0_164, %c0_165] : memref<3x8x4x18xbf16, #tpu.memory_space<vmem>>, vector<1x1x4x18xbf16>
    %216 = vector.shape_cast %215 : vector<1x1x4x18xbf16> to vector<4x18xbf16>
    %217 = vector.extract_strided_slice %216 {offsets = [0, 0], sizes = [4, 16], strides = [1, 1]} : vector<4x18xbf16> to vector<4x16xbf16>
    %cst_166 = arith.constant dense<0.000000e+00> : vector<8x16xf32>
    %218 = tpu.matmul %7, %217, %cst_166 {dimension_numbers = #tpu.dot_dimension_numbers<[1], [0], [0], [1], [0, 0, 1, 1], [], []>} : vector<8x4xbf16>, vector<4x16xbf16>, vector<8x16xf32> -> vector<8x16xf32>
    %219 = arith.addf %214, %218 : vector<8x16xf32>
    %220 = vector.extract_strided_slice %216 {offsets = [0, 1], sizes = [4, 16], strides = [1, 1]} : vector<4x18xbf16> to vector<4x16xbf16>
    %cst_167 = arith.constant dense<0.000000e+00> : vector<8x16xf32>
    %221 = tpu.matmul %9, %220, %cst_167 {dimension_numbers = #tpu.dot_dimension_numbers<[1], [0], [0], [1], [0, 0, 1, 1], [], []>} : vector<8x4xbf16>, vector<4x16xbf16>, vector<8x16xf32> -> vector<8x16xf32>
    %222 = arith.addf %219, %221 : vector<8x16xf32>
    %223 = vector.extract_strided_slice %216 {offsets = [0, 2], sizes = [4, 16], strides = [1, 1]} : vector<4x18xbf16> to vector<4x16xbf16>
    %cst_168 = arith.constant dense<0.000000e+00> : vector<8x16xf32>
    %224 = tpu.matmul %11, %223, %cst_168 {dimension_numbers = #tpu.dot_dimension_numbers<[1], [0], [0], [1], [0, 0, 1, 1], [], []>} : vector<8x4xbf16>, vector<4x16xbf16>, vector<8x16xf32> -> vector<8x16xf32>
    %225 = arith.addf %222, %224 : vector<8x16xf32>
    %c2_169 = arith.constant 2 : index
    %c5_170 = arith.constant 5 : index
    %c0_171 = arith.constant 0 : index
    %c0_172 = arith.constant 0 : index
    %226 = vector.load %arg1[%c2_169, %c5_170, %c0_171, %c0_172] : memref<3x8x4x18xbf16, #tpu.memory_space<vmem>>, vector<1x1x4x18xbf16>
    %227 = vector.shape_cast %226 : vector<1x1x4x18xbf16> to vector<4x18xbf16>
    %228 = vector.extract_strided_slice %227 {offsets = [0, 0], sizes = [4, 16], strides = [1, 1]} : vector<4x18xbf16> to vector<4x16xbf16>
    %cst_173 = arith.constant dense<0.000000e+00> : vector<8x16xf32>
    %229 = tpu.matmul %13, %228, %cst_173 {dimension_numbers = #tpu.dot_dimension_numbers<[1], [0], [0], [1], [0, 0, 1, 1], [], []>} : vector<8x4xbf16>, vector<4x16xbf16>, vector<8x16xf32> -> vector<8x16xf32>
    %230 = arith.addf %225, %229 : vector<8x16xf32>
    %231 = vector.extract_strided_slice %227 {offsets = [0, 1], sizes = [4, 16], strides = [1, 1]} : vector<4x18xbf16> to vector<4x16xbf16>
    %cst_174 = arith.constant dense<0.000000e+00> : vector<8x16xf32>
    %232 = tpu.matmul %15, %231, %cst_174 {dimension_numbers = #tpu.dot_dimension_numbers<[1], [0], [0], [1], [0, 0, 1, 1], [], []>} : vector<8x4xbf16>, vector<4x16xbf16>, vector<8x16xf32> -> vector<8x16xf32>
    %233 = arith.addf %230, %232 : vector<8x16xf32>
    %234 = vector.extract_strided_slice %227 {offsets = [0, 2], sizes = [4, 16], strides = [1, 1]} : vector<4x18xbf16> to vector<4x16xbf16>
    %cst_175 = arith.constant dense<0.000000e+00> : vector<8x16xf32>
    %235 = tpu.matmul %17, %234, %cst_175 {dimension_numbers = #tpu.dot_dimension_numbers<[1], [0], [0], [1], [0, 0, 1, 1], [], []>} : vector<8x4xbf16>, vector<4x16xbf16>, vector<8x16xf32> -> vector<8x16xf32>
    %236 = arith.addf %233, %235 : vector<8x16xf32>
    %c5_176 = arith.constant 5 : index
    %c0_177 = arith.constant 0 : index
    %c0_178 = arith.constant 0 : index
    %237 = vector.load %arg3[%c5_176, %c0_177, %c0_178] : memref<8x8x16xf32, #tpu.memory_space<vmem>>, vector<1x8x16xf32>
    %238 = vector.shape_cast %237 : vector<1x8x16xf32> to vector<8x16xf32>
    %239 = vector.shape_cast %236 : vector<8x16xf32> to vector<1x8x16xf32>
    tpu.vector_store %arg3[%c5_176, %c0_177, %c0_178], %239 {strides = array<i32>} : memref<8x8x16xf32, #tpu.memory_space<vmem>>, vector<1x8x16xf32>,
    %cst_179 = arith.constant 0.000000e+00 : f32
    %240 = vector.broadcast %cst_179 : f32 to vector<8x16xf32>
    %c0_180 = arith.constant 0 : index
    %c6 = arith.constant 6 : index
    %c0_181 = arith.constant 0 : index
    %c0_182 = arith.constant 0 : index
    %241 = vector.load %arg1[%c0_180, %c6, %c0_181, %c0_182] : memref<3x8x4x18xbf16, #tpu.memory_space<vmem>>, vector<1x1x4x18xbf16>
    %242 = vector.shape_cast %241 : vector<1x1x4x18xbf16> to vector<4x18xbf16>
    %243 = vector.extract_strided_slice %242 {offsets = [0, 0], sizes = [4, 16], strides = [1, 1]} : vector<4x18xbf16> to vector<4x16xbf16>
    %cst_183 = arith.constant dense<0.000000e+00> : vector<8x16xf32>
    %244 = tpu.matmul %1, %243, %cst_183 {dimension_numbers = #tpu.dot_dimension_numbers<[1], [0], [0], [1], [0, 0, 1, 1], [], []>} : vector<8x4xbf16>, vector<4x16xbf16>, vector<8x16xf32> -> vector<8x16xf32>
    %245 = arith.addf %240, %244 : vector<8x16xf32>
    %246 = vector.extract_strided_slice %242 {offsets = [0, 1], sizes = [4, 16], strides = [1, 1]} : vector<4x18xbf16> to vector<4x16xbf16>
    %cst_184 = arith.constant dense<0.000000e+00> : vector<8x16xf32>
    %247 = tpu.matmul %3, %246, %cst_184 {dimension_numbers = #tpu.dot_dimension_numbers<[1], [0], [0], [1], [0, 0, 1, 1], [], []>} : vector<8x4xbf16>, vector<4x16xbf16>, vector<8x16xf32> -> vector<8x16xf32>
    %248 = arith.addf %245, %247 : vector<8x16xf32>
    %249 = vector.extract_strided_slice %242 {offsets = [0, 2], sizes = [4, 16], strides = [1, 1]} : vector<4x18xbf16> to vector<4x16xbf16>
    %cst_185 = arith.constant dense<0.000000e+00> : vector<8x16xf32>
    %250 = tpu.matmul %5, %249, %cst_185 {dimension_numbers = #tpu.dot_dimension_numbers<[1], [0], [0], [1], [0, 0, 1, 1], [], []>} : vector<8x4xbf16>, vector<4x16xbf16>, vector<8x16xf32> -> vector<8x16xf32>
    %251 = arith.addf %248, %250 : vector<8x16xf32>
    %c1_186 = arith.constant 1 : index
    %c6_187 = arith.constant 6 : index
    %c0_188 = arith.constant 0 : index
    %c0_189 = arith.constant 0 : index
    %252 = vector.load %arg1[%c1_186, %c6_187, %c0_188, %c0_189] : memref<3x8x4x18xbf16, #tpu.memory_space<vmem>>, vector<1x1x4x18xbf16>
    %253 = vector.shape_cast %252 : vector<1x1x4x18xbf16> to vector<4x18xbf16>
    %254 = vector.extract_strided_slice %253 {offsets = [0, 0], sizes = [4, 16], strides = [1, 1]} : vector<4x18xbf16> to vector<4x16xbf16>
    %cst_190 = arith.constant dense<0.000000e+00> : vector<8x16xf32>
    %255 = tpu.matmul %7, %254, %cst_190 {dimension_numbers = #tpu.dot_dimension_numbers<[1], [0], [0], [1], [0, 0, 1, 1], [], []>} : vector<8x4xbf16>, vector<4x16xbf16>, vector<8x16xf32> -> vector<8x16xf32>
    %256 = arith.addf %251, %255 : vector<8x16xf32>
    %257 = vector.extract_strided_slice %253 {offsets = [0, 1], sizes = [4, 16], strides = [1, 1]} : vector<4x18xbf16> to vector<4x16xbf16>
    %cst_191 = arith.constant dense<0.000000e+00> : vector<8x16xf32>
    %258 = tpu.matmul %9, %257, %cst_191 {dimension_numbers = #tpu.dot_dimension_numbers<[1], [0], [0], [1], [0, 0, 1, 1], [], []>} : vector<8x4xbf16>, vector<4x16xbf16>, vector<8x16xf32> -> vector<8x16xf32>
    %259 = arith.addf %256, %258 : vector<8x16xf32>
    %260 = vector.extract_strided_slice %253 {offsets = [0, 2], sizes = [4, 16], strides = [1, 1]} : vector<4x18xbf16> to vector<4x16xbf16>
    %cst_192 = arith.constant dense<0.000000e+00> : vector<8x16xf32>
    %261 = tpu.matmul %11, %260, %cst_192 {dimension_numbers = #tpu.dot_dimension_numbers<[1], [0], [0], [1], [0, 0, 1, 1], [], []>} : vector<8x4xbf16>, vector<4x16xbf16>, vector<8x16xf32> -> vector<8x16xf32>
    %262 = arith.addf %259, %261 : vector<8x16xf32>
    %c2_193 = arith.constant 2 : index
    %c6_194 = arith.constant 6 : index
    %c0_195 = arith.constant 0 : index
    %c0_196 = arith.constant 0 : index
    %263 = vector.load %arg1[%c2_193, %c6_194, %c0_195, %c0_196] : memref<3x8x4x18xbf16, #tpu.memory_space<vmem>>, vector<1x1x4x18xbf16>
    %264 = vector.shape_cast %263 : vector<1x1x4x18xbf16> to vector<4x18xbf16>
    %265 = vector.extract_strided_slice %264 {offsets = [0, 0], sizes = [4, 16], strides = [1, 1]} : vector<4x18xbf16> to vector<4x16xbf16>
    %cst_197 = arith.constant dense<0.000000e+00> : vector<8x16xf32>
    %266 = tpu.matmul %13, %265, %cst_197 {dimension_numbers = #tpu.dot_dimension_numbers<[1], [0], [0], [1], [0, 0, 1, 1], [], []>} : vector<8x4xbf16>, vector<4x16xbf16>, vector<8x16xf32> -> vector<8x16xf32>
    %267 = arith.addf %262, %266 : vector<8x16xf32>
    %268 = vector.extract_strided_slice %264 {offsets = [0, 1], sizes = [4, 16], strides = [1, 1]} : vector<4x18xbf16> to vector<4x16xbf16>
    %cst_198 = arith.constant dense<0.000000e+00> : vector<8x16xf32>
    %269 = tpu.matmul %15, %268, %cst_198 {dimension_numbers = #tpu.dot_dimension_numbers<[1], [0], [0], [1], [0, 0, 1, 1], [], []>} : vector<8x4xbf16>, vector<4x16xbf16>, vector<8x16xf32> -> vector<8x16xf32>
    %270 = arith.addf %267, %269 : vector<8x16xf32>
    %271 = vector.extract_strided_slice %264 {offsets = [0, 2], sizes = [4, 16], strides = [1, 1]} : vector<4x18xbf16> to vector<4x16xbf16>
    %cst_199 = arith.constant dense<0.000000e+00> : vector<8x16xf32>
    %272 = tpu.matmul %17, %271, %cst_199 {dimension_numbers = #tpu.dot_dimension_numbers<[1], [0], [0], [1], [0, 0, 1, 1], [], []>} : vector<8x4xbf16>, vector<4x16xbf16>, vector<8x16xf32> -> vector<8x16xf32>
    %273 = arith.addf %270, %272 : vector<8x16xf32>
    %c6_200 = arith.constant 6 : index
    %c0_201 = arith.constant 0 : index
    %c0_202 = arith.constant 0 : index
    %274 = vector.load %arg3[%c6_200, %c0_201, %c0_202] : memref<8x8x16xf32, #tpu.memory_space<vmem>>, vector<1x8x16xf32>
    %275 = vector.shape_cast %274 : vector<1x8x16xf32> to vector<8x16xf32>
    %276 = vector.shape_cast %273 : vector<8x16xf32> to vector<1x8x16xf32>
    tpu.vector_store %arg3[%c6_200, %c0_201, %c0_202], %276 {strides = array<i32>} : memref<8x8x16xf32, #tpu.memory_space<vmem>>, vector<1x8x16xf32>,
    %cst_203 = arith.constant 0.000000e+00 : f32
    %277 = vector.broadcast %cst_203 : f32 to vector<8x16xf32>
    %c0_204 = arith.constant 0 : index
    %c7 = arith.constant 7 : index
    %c0_205 = arith.constant 0 : index
    %c0_206 = arith.constant 0 : index
    %278 = vector.load %arg1[%c0_204, %c7, %c0_205, %c0_206] : memref<3x8x4x18xbf16, #tpu.memory_space<vmem>>, vector<1x1x4x18xbf16>
    %279 = vector.shape_cast %278 : vector<1x1x4x18xbf16> to vector<4x18xbf16>
    %280 = vector.extract_strided_slice %279 {offsets = [0, 0], sizes = [4, 16], strides = [1, 1]} : vector<4x18xbf16> to vector<4x16xbf16>
    %cst_207 = arith.constant dense<0.000000e+00> : vector<8x16xf32>
    %281 = tpu.matmul %1, %280, %cst_207 {dimension_numbers = #tpu.dot_dimension_numbers<[1], [0], [0], [1], [0, 0, 1, 1], [], []>} : vector<8x4xbf16>, vector<4x16xbf16>, vector<8x16xf32> -> vector<8x16xf32>
    %282 = arith.addf %277, %281 : vector<8x16xf32>
    %283 = vector.extract_strided_slice %279 {offsets = [0, 1], sizes = [4, 16], strides = [1, 1]} : vector<4x18xbf16> to vector<4x16xbf16>
    %cst_208 = arith.constant dense<0.000000e+00> : vector<8x16xf32>
    %284 = tpu.matmul %3, %283, %cst_208 {dimension_numbers = #tpu.dot_dimension_numbers<[1], [0], [0], [1], [0, 0, 1, 1], [], []>} : vector<8x4xbf16>, vector<4x16xbf16>, vector<8x16xf32> -> vector<8x16xf32>
    %285 = arith.addf %282, %284 : vector<8x16xf32>
    %286 = vector.extract_strided_slice %279 {offsets = [0, 2], sizes = [4, 16], strides = [1, 1]} : vector<4x18xbf16> to vector<4x16xbf16>
    %cst_209 = arith.constant dense<0.000000e+00> : vector<8x16xf32>
    %287 = tpu.matmul %5, %286, %cst_209 {dimension_numbers = #tpu.dot_dimension_numbers<[1], [0], [0], [1], [0, 0, 1, 1], [], []>} : vector<8x4xbf16>, vector<4x16xbf16>, vector<8x16xf32> -> vector<8x16xf32>
    %288 = arith.addf %285, %287 : vector<8x16xf32>
    %c1_210 = arith.constant 1 : index
    %c7_211 = arith.constant 7 : index
    %c0_212 = arith.constant 0 : index
    %c0_213 = arith.constant 0 : index
    %289 = vector.load %arg1[%c1_210, %c7_211, %c0_212, %c0_213] : memref<3x8x4x18xbf16, #tpu.memory_space<vmem>>, vector<1x1x4x18xbf16>
    %290 = vector.shape_cast %289 : vector<1x1x4x18xbf16> to vector<4x18xbf16>
    %291 = vector.extract_strided_slice %290 {offsets = [0, 0], sizes = [4, 16], strides = [1, 1]} : vector<4x18xbf16> to vector<4x16xbf16>
    %cst_214 = arith.constant dense<0.000000e+00> : vector<8x16xf32>
    %292 = tpu.matmul %7, %291, %cst_214 {dimension_numbers = #tpu.dot_dimension_numbers<[1], [0], [0], [1], [0, 0, 1, 1], [], []>} : vector<8x4xbf16>, vector<4x16xbf16>, vector<8x16xf32> -> vector<8x16xf32>
    %293 = arith.addf %288, %292 : vector<8x16xf32>
    %294 = vector.extract_strided_slice %290 {offsets = [0, 1], sizes = [4, 16], strides = [1, 1]} : vector<4x18xbf16> to vector<4x16xbf16>
    %cst_215 = arith.constant dense<0.000000e+00> : vector<8x16xf32>
    %295 = tpu.matmul %9, %294, %cst_215 {dimension_numbers = #tpu.dot_dimension_numbers<[1], [0], [0], [1], [0, 0, 1, 1], [], []>} : vector<8x4xbf16>, vector<4x16xbf16>, vector<8x16xf32> -> vector<8x16xf32>
    %296 = arith.addf %293, %295 : vector<8x16xf32>
    %297 = vector.extract_strided_slice %290 {offsets = [0, 2], sizes = [4, 16], strides = [1, 1]} : vector<4x18xbf16> to vector<4x16xbf16>
    %cst_216 = arith.constant dense<0.000000e+00> : vector<8x16xf32>
    %298 = tpu.matmul %11, %297, %cst_216 {dimension_numbers = #tpu.dot_dimension_numbers<[1], [0], [0], [1], [0, 0, 1, 1], [], []>} : vector<8x4xbf16>, vector<4x16xbf16>, vector<8x16xf32> -> vector<8x16xf32>
    %299 = arith.addf %296, %298 : vector<8x16xf32>
    %c2_217 = arith.constant 2 : index
    %c7_218 = arith.constant 7 : index
    %c0_219 = arith.constant 0 : index
    %c0_220 = arith.constant 0 : index
    %300 = vector.load %arg1[%c2_217, %c7_218, %c0_219, %c0_220] : memref<3x8x4x18xbf16, #tpu.memory_space<vmem>>, vector<1x1x4x18xbf16>
    %301 = vector.shape_cast %300 : vector<1x1x4x18xbf16> to vector<4x18xbf16>
    %302 = vector.extract_strided_slice %301 {offsets = [0, 0], sizes = [4, 16], strides = [1, 1]} : vector<4x18xbf16> to vector<4x16xbf16>
    %cst_221 = arith.constant dense<0.000000e+00> : vector<8x16xf32>
    %303 = tpu.matmul %13, %302, %cst_221 {dimension_numbers = #tpu.dot_dimension_numbers<[1], [0], [0], [1], [0, 0, 1, 1], [], []>} : vector<8x4xbf16>, vector<4x16xbf16>, vector<8x16xf32> -> vector<8x16xf32>
    %304 = arith.addf %299, %303 : vector<8x16xf32>
    %305 = vector.extract_strided_slice %301 {offsets = [0, 1], sizes = [4, 16], strides = [1, 1]} : vector<4x18xbf16> to vector<4x16xbf16>
    %cst_222 = arith.constant dense<0.000000e+00> : vector<8x16xf32>
    %306 = tpu.matmul %15, %305, %cst_222 {dimension_numbers = #tpu.dot_dimension_numbers<[1], [0], [0], [1], [0, 0, 1, 1], [], []>} : vector<8x4xbf16>, vector<4x16xbf16>, vector<8x16xf32> -> vector<8x16xf32>
    %307 = arith.addf %304, %306 : vector<8x16xf32>
    %308 = vector.extract_strided_slice %301 {offsets = [0, 2], sizes = [4, 16], strides = [1, 1]} : vector<4x18xbf16> to vector<4x16xbf16>
    %cst_223 = arith.constant dense<0.000000e+00> : vector<8x16xf32>
    %309 = tpu.matmul %17, %308, %cst_223 {dimension_numbers = #tpu.dot_dimension_numbers<[1], [0], [0], [1], [0, 0, 1, 1], [], []>} : vector<8x4xbf16>, vector<4x16xbf16>, vector<8x16xf32> -> vector<8x16xf32>
    %310 = arith.addf %307, %309 : vector<8x16xf32>
    %c7_224 = arith.constant 7 : index
    %c0_225 = arith.constant 0 : index
    %c0_226 = arith.constant 0 : index
    %311 = vector.load %arg3[%c7_224, %c0_225, %c0_226] : memref<8x8x16xf32, #tpu.memory_space<vmem>>, vector<1x8x16xf32>
    %312 = vector.shape_cast %311 : vector<1x8x16xf32> to vector<8x16xf32>
    %313 = vector.shape_cast %310 : vector<8x16xf32> to vector<1x8x16xf32>
    tpu.vector_store %arg3[%c7_224, %c0_225, %c0_226], %313 {strides = array<i32>} : memref<8x8x16xf32, #tpu.memory_space<vmem>>, vector<1x8x16xf32>,
    return
  }
  func.func @transform_0(%arg0: i32) -> (i32, i32, i32, i32) {
    %c0_i32 = arith.constant 0 : i32
    %c0_i32_0 = arith.constant 0 : i32
    %c0_i32_1 = arith.constant 0 : i32
    %c0_i32_2 = arith.constant 0 : i32
    return %c0_i32, %arg0, %c0_i32_0, %c0_i32_1 : i32, i32, i32, i32
  }
  func.func @transform_1(%arg0: i32) -> (i32, i32, i32, i32) {
    %c0_i32 = arith.constant 0 : i32
    %c0_i32_0 = arith.constant 0 : i32
    %c0_i32_1 = arith.constant 0 : i32
    %c0_i32_2 = arith.constant 0 : i32
    %c0_i32_3 = arith.constant 0 : i32
    return %c0_i32, %c0_i32_0, %c0_i32_1, %c0_i32_2 : i32, i32, i32, i32
  }
  func.func @transform_2(%arg0: i32) -> (i32, i32, i32) {
    %c0_i32 = arith.constant 0 : i32
    %c0_i32_0 = arith.constant 0 : i32
    %c0_i32_1 = arith.constant 0 : i32
    return %arg0, %c0_i32, %c0_i32_0 : i32, i32, i32
  }
}

</mosaic_0001>

<bundles_post_ra>
// kernel: tpu_custom_call.1
= control target key start
LH: loop header
LB: loop body
LE: loop exit
PB: predicated region body
PF: predicated region fallthrough
CT: control target
= control target key end

     0   :  { %7 = vsyncpa [#allocation3], 0  ;;  %s5778_s0 = inlined_call_operand.hbm [shape: bf16[3,16,4,18], index: 0, kind: input, shape index: {}]   ;;  %s5779_s1 = inlined_call_operand.vmem [shape: bf16[3,3,8,4], index: 1, kind: input, shape index: {}]   ;;  %s5780_s2 = inlined_call_operand.hbm [shape: f32[16,8,16], index: 2, kind: output, shape index: {}]  }
   0x1   :  { %9 = vsyncpa [#allocation3 + $0x1], 0 }
   0x2   :  { %10 = vsyncpa [#allocation4], 0 }
   0x3   :  { %12 = vsyncpa [#allocation4 + $0x1], 0  ;;  %s4944_s9 = smov 0   ;;  %s4946_s10 = smov 0  }
   0x4   :  { %s4948_s11 = smov 0   ;;  %s4950_s12 = smov 0  }
   0x5 LB: > { %s4965_s13 = sadd.s32 4294967295, %s4913_s12   ;;  %s3826_s14 = sadd.s32 4294967294, %s4913_s12   ;;  %s4913_s12 = sphi %s4950_s12, %s5788_s12   ;;  %s4909_s11 = sphi %s4948_s11, %s5787_s11   ;;  %s4905_s10 = sphi %s4946_s10, %s5786_s10   ;;  %s4901_s9 = sphi %s4944_s9, %s5785_s9  }
   0x6   : > { %s4969_s15 = sadd.s32 1, %s4913_s12   ;;  %s25_s16 = sadd.s32 1, %s4909_s11 }
   0x7   : > { %s22_s17 = ssub.s32 %s4913_s12, %s4969_s15  ;;  %p32_p0 = scmp.ne.s32.totalorder %s4909_s11, %s4905_s10 }
   0x8   : > { %p23_p1 = scmp.eq.s32.totalorder %s22_s17, 0  ;;  %p33_p2 = scmp.eq.s32.totalorder %s4913_s12, 0 }
   0x9   : > { %p38_p3 = scmp.ne.s32.totalorder %s4905_s10, %s4901_s9  ;;  %p39_p4 = scmp.eq.s32.totalorder %s4965_s13, 0 }
   0xa   : > { %s4981_s18 = scalar_select %p23_p1, %s4909_s11, %s25_s16  }
   0xb   : > { %p4983_p5 = por %p33_p2, %p32_p0  ;;  %p4987_p6 = por %p39_p4, %p38_p3 }
   0xc   : > { %p83_p7 = scmp.eq.s32.totalorder %s4965_s13, 1  ;;  %p89_p8 = scmp.eq.s32.totalorder %s3826_s14, 1 }
   0xd   : > { %p3828_p11 = scmp.ge.s32.totalorder %s4913_s12, 2 }
   0xe   : > { %p4992_p9 = por %p83_p7, %p32_p0  ;;  %p4996_p10 = por %p89_p8, %p38_p3 }
   0xf   : > { %108 = sbr.rel (%p3828_p11) target bundleno = 36 (0x24), region = 20 }
  0x16   : > { %s112_s23 = sand.u32 1, %s4909_s11   ;;  %s3950_s25 = sshll.u32 %s4913_s12, 8 }
  0x17   : > { %s4784_s24 = smul.u32 48, %s112_s23  ;;  %s4915_s26 = smov 512  }
  0x18   : > { %4787 = sst [smem:[#allocation7]] (%p4983_p5), %s4915_s26  ;;  %s122_s30 = scalar_lea.hbm %s5778_s0, %s3950_s25 }
  0x19   : > { %s4786_s27 = scalar_select %p4983_p5, [#allocation0], [#allocation8] }
  0x1a   : > { %s116_s4 = scalar_lea.vmem [#allocation2], %s4784_s24  ;;  %s4916_s6 = smov 256  }
  0x1b   : > { %s127_s3 = sld [smem:[%s4786_s27]]   ;;  %s135_s5 = sshll.u32 %s116_s4, 4  ;;  %s136_s5 = int_to_ptr.vmem [resolvable:$true] %s135_s5 }
  0x1c   : > { %4788 = sst [smem:[#allocation7 + $0x1]] (%p4983_p5), %s4916_s6  ;;  %s4917_s7 = smov 8  }
  0x1d   : > { %4789 = sst [smem:[#allocation7 + $0x2]] (%p4983_p5), %s4917_s7  ;;  %s4918_s8 = smov 32  }
  0x1e   : > { %4790 = sst [smem:[#allocation7 + $0x3]] (%p4983_p5), %s4918_s8  ;;  %s4919_s14 = smov 2  }
  0x1f   : > { %4791 = sst [smem:[#allocation7 + $0x4]] (%p4983_p5), %s4918_s8  ;;  %s113_s24 = scalar_lea.sflag [#allocation3], %s112_s23 }
  0x20   : > { %4792 = sst [smem:[#allocation7 + $0x5]] (%p4983_p5), %s4919_s14  ;;  %s4920_s25 = smov [#allocation6]  }
  0x21   : > { %s3831_s16 = sshll.u32 %s127_s3, 26 }
  0x22   : > { %s3832_s17 = sadd.s32 134217728, %s3831_s16 }
  0x23   : > { %4793 = dma.general (%p4983_p5), %s122_s30, 768, %s136_s5, %s113_s24, %s4920_s25, [#allocation7], %s3832_s17, 0  }
  0x24 PF: > { %p3833_p12 = scmp.ge.s32.totalorder %s4913_s12, 1  ;;  %p156_p13 = scmp.lt.s32.totalorder %s4913_s12, 3 }
  0x26   : > { %p157_p0 = pnand %p3833_p12, %p156_p13 }
  0x27   : > { %s5027_s26 = sand.u32 (!%p157_p0), 1, %s4905_s10  }
  0x28   : > { %160 = sbr.rel (%p157_p0) target bundleno = 816 (0x330), region = 28  ;;  %s163_s28 = scalar_lea.sflag (!%p157_p0), [#allocation3], %s5027_s26 }
  0x29   : > { %s4785_s27 = smul.u32 (!%p157_p0), 48, %s5027_s26 }
  0x2b   : > { %s5031_s29 = scalar_lea.vmem (!%p157_p0), [#allocation2], %s4785_s27 }
  0x2f   : > { %4892 = dma.done.wait (%p4987_p6), %s163_s28, 768  }
  0x30   : > { %4894 = vsyncadd (%p4987_p6), %s163_s28, 4294966528  ;;  %v212_v0 = vlaneseq  ;;  %v4921_v1 = vmov 1983009808   ;;  %v4922_v3 = vmov 0.0   ;;  %vm4923_vm0 = vmmov 0   ;;  %s4924_s19 = smov 127  }
  0x31   : > { %v210_v2 = vunpack.c.l.s4 %v4921_v1  ;;  %4096 = vmatprep.subr.bf16.mxu0 %v4922_v3  ;;  %4150 = vmatprep.subr.bf16.mxu1 %v4922_v3  ;;  %v5046_v7 = vld [vmem:[%s5031_s29] sm:$0x3]  ;;  %v5049_v8 = vld [vmem:[%s5031_s29 + $0x2] sm:$0x3]  ;;  %s4925_s20 = smov 126   ;;  %vm222_vm1 = vcmask 1041408  }
  0x32   : > { %v213_v4 = vshrl.u32 %v212_v0, 7  ;;  %4098 = vmatprep.mubr.msk.bf16.mxu0 %vm4923_vm0, %v4922_v3  ;;  %4152 = vmatprep.mubr.msk.bf16.mxu1 %vm4923_vm0, %v4922_v3  ;;  %v5058_v11 = vld [vmem:[%s5031_s29 + $0x12] sm:$0x3]  ;;  %v5061_v12 = vld [vmem:[%s5031_s29 + $0x10] sm:$0x3]  ;;  %vm218_vm2 = vcmask 31744  }
  0x33   : > { %v211_v5 = vunpack.c.0.s8 %v210_v2  ;;  %v5072_v15 = vld [vmem:[%s5031_s29 + $0x22] sm:$0x3]  ;;  %v5075_v16 = vld [vmem:[%s5031_s29 + $0x20] sm:$0x3]  ;;  %v5086_v19 = vld [vmem:[%s5031_s29 + $0x6] sm:$0x3] }
  0x34   : > { %v5089_v20 = vld [vmem:[%s5031_s29 + $0x4] sm:$0x3]  ;;  %v5100_v23 = vld [vmem:[%s5031_s29 + $0x16] sm:$0x3]  ;;  %v5103_v24 = vld [vmem:[%s5031_s29 + $0x14] sm:$0x3] }
  0x35   : > { %v5043_v6 = vsub.s32 %v211_v5, %v213_v4  ;;  %v5116_v27 = vld [vmem:[%s5031_s29 + $0x26] sm:$0x3]  ;;  %v5119_v28 = vld [vmem:[%s5031_s29 + $0x24] sm:$0x3]  ;;  %v5130_v31 = vld [vmem:[%s5031_s29 + $0x8] sm:$0x3] }
  0x36   : > { %v5135_v33 = vld [vmem:[%s5031_s29 + $0xa] sm:$0x3]  ;;  %v5147_v37 = vld [vmem:[%s5779_s1 + $0x4] sm:$0xf]  ;;  %v270_v38 = vsel %vm222_vm1, %v5046_v7, 0  ;;  %v729_v41 = vsel %vm222_vm1, %v5049_v8, 0 }
  0x37   : > { %v215_v9 = vrot.slane %v5046_v7, %v5043_v6  ;;  %v682_v10 = vrot.slane %v5049_v8, %v5043_v6  ;;  %v870_v13 = vrot.slane %v5058_v11, %v5043_v6  ;;  %v417_v14 = vrot.slane %v5061_v12, %v5043_v6  ;;  %v5164_v42 = vld [vmem:[%s5031_s29 + $0x1a] sm:$0x3]  ;;  %v5167_v43 = vld [vmem:[%s5031_s29 + $0x18] sm:$0x3]  ;;  %v5181_v47 = vld [vmem:[%s5779_s1] sm:$0xf] }
  0x38   : > { %v1016_v17 = vrot.slane %v5072_v15, %v5043_v6  ;;  %v572_v18 = vrot.slane %v5075_v16, %v5043_v6  ;;  %v1558_v21 = vrot.slane %v5086_v19, %v5043_v6  ;;  %v1120_v22 = vrot.slane %v5089_v20, %v5043_v6  ;;  %v5200_v51 = vld [vmem:[%s5779_s1 + $0x8] sm:$0xf]  ;;  %v5219_v55 = vld [vmem:[%s5779_s1 + $0xc] sm:$0xf]  ;;  %v5248_v0 = vld [vmem:[%s5779_s1 + $0x10] sm:$0xf] }
  0x39   : > { %216 = vrot.lane.b32.xlu0 %v215_v9, %s4924_s19  ;;  %312 = vrot.lane.b32.xlu1 %v215_v9, %s4925_s20  ;;  %v1746_v25 = vrot.slane %v5100_v23, %v5043_v6  ;;  %v1308_v26 = vrot.slane %v5103_v24, %v5043_v6  ;;  %v1892_v29 = vrot.slane %v5116_v27, %v5043_v6  ;;  %v367_v52 = vsel %vm222_vm1, %v5061_v12, 0  ;;  %v5231_v59 = vld [vmem:[%s5031_s29 + $0x2a] sm:$0x3]  ;;  %v5234_v60 = vld [vmem:[%s5031_s29 + $0x28] sm:$0x3]  ;;  %s3951_s4 = sshll.u32 %s4965_s13, 10 }
  0x3a   : > { %v1454_v30 = vrot.slane %v5119_v28, %v5043_v6  ;;  %v1996_v32 = vrot.slane %v5130_v31, %v5043_v6  ;;  %v2434_v34 = vrot.slane %v5135_v33, %v5043_v6  ;;  %v2622_v45 = vrot.slane %v5164_v42, %v5043_v6  ;;  %v5267_v5 = vld [vmem:[%s5779_s1 + $0x14] sm:$0xf]  ;;  %v5279_v9 = vld [vmem:[%s5031_s29 + $0xc] sm:$0x3]  ;;  %s5732_s7 = scalar_lea.hbm %s5780_s2, %s3951_s4  ;;  %s3740_s13 = scalar_lea.sflag [#allocation4], %s5027_s26 }
  0x3b   : > { %v2184_v46 = vrot.slane %v5167_v43, %v5043_v6  ;;  %v820_v53 = vsel %vm222_vm1, %v5058_v11, 0  ;;  %v2768_v61 = vrot.slane %v5231_v59, %v5043_v6  ;;  %v2330_v62 = vrot.slane %v5234_v60, %v5043_v6  ;;  %v5286_v11 = vld [vmem:[%s5031_s29 + $0xe] sm:$0x3]  ;;  %s4926_s14 = smov [#allocation5]  }
  0x3c   : > { %v522_v7 = vsel %vm222_vm1, %v5075_v16, 0  ;;  %v966_v8 = vsel %vm222_vm1, %v5072_v15, 0  ;;  %v3310_v12 = vrot.slane %v5286_v11, %v5043_v6  ;;  %vm671_vm3 = vcmask 130048   ;;  %s4851_s16 = sshll.u32 %s4926_s14, 4  ;;  %s4852_s16 = int_to_ptr.vmem [resolvable:$false] %s4851_s16 }
  0x3d   : > { %683 = vrot.lane.b32.xlu0 %v682_v10, %s4924_s19  ;;  %771 = vrot.lane.b32.xlu1 %v682_v10, %s4925_s20  ;;  %v2872_v10 = vrot.slane %v5279_v9, %v5043_v6  ;;  %s4853_s17 = scalar_lea.vmem %s4852_s16, 2048 }
  0x41   : > { %871 = vrot.lane.b32.xlu1 %v870_v13, %s4924_s19  ;;  %418 = vrot.lane.b32.xlu0 %v417_v14, %s4924_s19 }
  0x45   : > { %917 = vrot.lane.b32.xlu1 %v870_v13, %s4925_s20  ;;  %467 = vrot.lane.b32.xlu0 %v417_v14, %s4925_s20  ;;  %v5298_v14 = vld [vmem:[%s5779_s1 + $0x18] sm:$0xf] }
  0x49   : > { %1017 = vrot.lane.b32.xlu1 %v1016_v17, %s4924_s19  ;;  %573 = vrot.lane.b32.xlu0 %v572_v18, %s4924_s19 }
  0x4d   : > { %1063 = vrot.lane.b32.xlu1 %v1016_v17, %s4925_s20  ;;  %622 = vrot.lane.b32.xlu0 %v572_v18, %s4925_s20 }
  0x51   : > { %1559 = vrot.lane.b32.xlu1 %v1558_v21, %s4924_s19  ;;  %1121 = vrot.lane.b32.xlu0 %v1120_v22, %s4924_s19 }
  0x55   : > { %1647 = vrot.lane.b32.xlu1 %v1558_v21, %s4925_s20  ;;  %1209 = vrot.lane.b32.xlu0 %v1120_v22, %s4925_s20  ;;  %v5317_v21 = vld [vmem:[%s5779_s1 + $0x1c] sm:$0xf] }
  0x59   : > { %1747 = vrot.lane.b32.xlu1 %v1746_v25, %s4924_s19  ;;  %1309 = vrot.lane.b32.xlu0 %v1308_v26, %s4924_s19 }
  0x5d   : > { %1793 = vrot.lane.b32.xlu1 %v1746_v25, %s4925_s20  ;;  %1355 = vrot.lane.b32.xlu0 %v1308_v26, %s4925_s20 }
  0x61   : > { %1893 = vrot.lane.b32.xlu1 %v1892_v29, %s4924_s19  ;;  %1455 = vrot.lane.b32.xlu0 %v1454_v30, %s4924_s19 }
  0x65   : > { %1939 = vrot.lane.b32.xlu1 %v1892_v29, %s4925_s20  ;;  %1501 = vrot.lane.b32.xlu0 %v1454_v30, %s4925_s20  ;;  %v5334_v30 = vld [vmem:[%s5779_s1 + $0x20] sm:$0xf] }
  0x69   : > { %1997 = vrot.lane.b32.xlu0 %v1996_v32, %s4924_s19  ;;  %2435 = vrot.lane.b32.xlu1 %v2434_v34, %s4924_s19 }
  0x6d   : > { %2085 = vrot.lane.b32.xlu0 %v1996_v32, %s4925_s20  ;;  %2523 = vrot.lane.b32.xlu1 %v2434_v34, %s4925_s20 }
  0x71   : > { %2623 = vrot.lane.b32.xlu1 %v2622_v45, %s4924_s19  ;;  %2185 = vrot.lane.b32.xlu0 %v2184_v46, %s4924_s19 }
  0x75   : > { %2669 = vrot.lane.b32.xlu1 %v2622_v45, %s4925_s20  ;;  %2231 = vrot.lane.b32.xlu0 %v2184_v46, %s4925_s20 }
  0x79   : > { %2769 = vrot.lane.b32.xlu1 %v2768_v61, %s4924_s19  ;;  %2331 = vrot.lane.b32.xlu0 %v2330_v62, %s4924_s19 }
  0x7d   : > { %2815 = vrot.lane.b32.xlu1 %v2768_v61, %s4925_s20  ;;  %2377 = vrot.lane.b32.xlu0 %v2330_v62, %s4925_s20 }
  0x81   : > { %2873 = vrot.lane.b32.xlu0 %v2872_v10, %s4924_s19  ;;  %3311 = vrot.lane.b32.xlu1 %v3310_v12, %s4924_s19 }
  0x85   : > { %2961 = vrot.lane.b32.xlu0 %v2872_v10, %s4925_s20  ;;  %3399 = vrot.lane.b32.xlu1 %v3310_v12, %s4925_s20 }
  0xab   : > { %v217_v35 = vpop.permute.xlu0 %216  ;;  %v313_v44 = vpop.permute.xlu1 %312 }
  0xac   : > { %v224_v36 = vsel %vm222_vm1, %v217_v35, 0  ;;  %v318_v48 = vsel %vm222_vm1, %v313_v44, 0 }
  0xad   : > { %4097 = vmatpush3.bf16.msra.mxu0 %v224_v36  ;;  %v1167_v36 = vsel %vm222_vm1, %v5089_v20, 0 }
  0xae   : > { %4102 = vmatprep.subr.bf16.mxu0 %v4922_v3 }
  0xaf   : > { %v684_v39 = vpop.permute.xlu0 %683  ;;  %v772_v49 = vpop.permute.xlu1 %771 }
  0xb0   : > { %4099 = vmatmul.mubr.msk.bf16.vlgmr.msra.gmra.mrb[0].mxu0 %vm218_vm2, %v5147_v37  ;;  %v686_v40 = vsel %vm222_vm1, %v684_v39, 0  ;;  %v774_v50 = vsel %vm222_vm1, %v772_v49, 0  ;;  %v5360_v39 = vld [vmem:[%s5031_s29 + $0x1e] sm:$0x3]  ;;  %v1696_v49 = vsel %vm222_vm1, %v5100_v23, 0 }
  0xb1   : > { %4151 = vmatpush3.bf16.msra.mxu1 %v686_v40  ;;  %4103 = vmatpush3.bf16.msra.mxu0 %v270_v38  ;;  %v1605_v38 = vsel %vm222_vm1, %v5086_v19, 0  ;;  %v5363_v40 = vld [vmem:[%s5031_s29 + $0x1c] sm:$0x3]  ;;  %v3498_v20 = vrot.slane %v5360_v39, %v5043_v6 }
  0xb2   : > { %4156 = vmatprep.subr.bf16.mxu1 %v4922_v3  ;;  %4104 = vmatprep.mubr.msk.bf16.mxu0 %vm4923_vm0, %v4922_v3 }
  0xb3   : > { %4108 = vmatprep.subr.bf16.mxu0 %v4922_v3  ;;  %v419_v54 = vpop.permute.xlu0 %418  ;;  %v872_v57 = vpop.permute.xlu1 %871  ;;  %3499 = vrot.lane.b32.xlu1 %v3498_v20, %s4924_s19 }
  0xb4   : > { %4153 = vmatmul.mubr.msk.bf16.vlgmr.msra.gmra.mrb[0].mxu1 %vm218_vm2, %v5147_v37  ;;  %v424_v56 = vsel %vm222_vm1, %v419_v54, 0  ;;  %v874_v58 = vsel %vm222_vm1, %v872_v57, 0  ;;  %v5415_v54 = vld [vmem:[%s5031_s29 + $0x2c] sm:$0x3] }
  0xb5   : > { %4157 = vmatpush3.bf16.msra.mxu1 %v729_v41  ;;  %4158 = vmatprep.mubr.msk.bf16.mxu1 %vm4923_vm0, %v4922_v3  ;;  %v3060_v41 = vrot.slane %v5363_v40, %v5043_v6  ;;  %v3206_v57 = vrot.slane %v5415_v54, %v5043_v6 }
  0xb6   : > { %4162 = vmatprep.subr.bf16.mxu1 %v4922_v3 }
  0xb7   : > { %v468_v63 = vpop.permute.xlu0 %467  ;;  %v918_v2 = vpop.permute.xlu1 %917  ;;  %3061 = vrot.lane.b32.xlu0 %v3060_v41, %s4924_s19  ;;  %3545 = vrot.lane.b32.xlu1 %v3498_v20, %s4925_s20 }
  0xb8   : > { %v473_v1 = vsel %vm222_vm1, %v468_v63, 0  ;;  %v920_v4 = vsel %vm222_vm1, %v918_v2, 0  ;;  %v1404_v63 = vsel %vm222_vm1, %v5119_v28, 0 }
  0xbb   : > { %v574_v13 = vpop.permute.xlu0 %573  ;;  %v1018_v16 = vpop.permute.xlu1 %1017  ;;  %3107 = vrot.lane.b32.xlu0 %v3060_v41, %s4925_s20 }
  0xbc   : > { %4105 = vmatmul.mubr.msk.bf16.vlgmr.msra.gmra.mrb[0].mxu0 %vm218_vm2, %v5181_v47  ;;  %v579_v15 = vsel %vm222_vm1, %v574_v13, 0  ;;  %v1020_v17 = vsel %vm222_vm1, %v1018_v16, 0 }
  0xbd   : > { %4109 = vmatpush3.bf16.msra.mxu0 %v318_v48  ;;  %4110 = vmatprep.mubr.msk.bf16.mxu0 %vm4923_vm0, %v4922_v3  ;;  %v1258_v48 = vsel %vm222_vm1, %v5103_v24, 0 }
  0xbe   : > { %4114 = vmatprep.subr.bf16.mxu0 %v4922_v3 }
  0xbf   : > { %v623_v18 = vpop.permute.xlu0 %622  ;;  %v1064_v25 = vpop.permute.xlu1 %1063  ;;  %3207 = vrot.lane.b32.xlu0 %v3206_v57, %s4924_s19 }
  0xc0   : > { %4159 = vmatmul.mubr.msk.bf16.vlgmr.msra.gmra.mrb[0].mxu1 %vm218_vm2, %v5181_v47  ;;  %v628_v22 = vsel %vm222_vm1, %v623_v18, 0  ;;  %v1066_v26 = vsel %vm222_vm1, %v1064_v25, 0  ;;  %v2043_v18 = vsel %vm222_vm1, %v5130_v31, 0 }
  0xc1   : > { %4163 = vmatpush3.bf16.msra.mxu1 %v774_v50  ;;  %4164 = vmatprep.mubr.msk.bf16.mxu1 %vm4923_vm0, %v4922_v3 }
  0xc2   : > { %4168 = vmatprep.subr.bf16.mxu1 %v4922_v3 }
  0xc3   : > { %v1122_v29 = vpop.permute.xlu0 %1121  ;;  %v1560_v34 = vpop.permute.xlu1 %1559  ;;  %3253 = vrot.lane.b32.xlu0 %v3206_v57, %s4925_s20 }
  0xc4   : > { %v1124_v32 = vsel %vm222_vm1, %v1122_v29, 0  ;;  %v1562_v35 = vsel %vm222_vm1, %v1560_v34, 0  ;;  %v2134_v29 = vsel %vm222_vm1, %v5167_v43, 0 }
  0xc7   : > { %v1210_v19 = vpop.permute.xlu0 %1209  ;;  %v1648_v45 = vpop.permute.xlu1 %1647 }
  0xc8   : > { %4111 = vmatmul.mubr.msk.bf16.vlgmr.msra.gmra.mrb[0].mxu0 %vm218_vm2, %v5200_v51  ;;  %v1212_v44 = vsel %vm222_vm1, %v1210_v19, 0  ;;  %v1650_v46 = vsel %vm222_vm1, %v1648_v45, 0  ;;  %v2280_v19 = vsel %vm222_vm1, %v5234_v60, 0 }
  0xc9   : > { %4115 = vmatpush3.bf16.msra.mxu0 %v367_v52  ;;  %4116 = vmatprep.mubr.msk.bf16.mxu0 %vm4923_vm0, %v4922_v3 }
  0xca   : > { %4120 = vmatprep.subr.bf16.mxu0 %v4922_v3 }
  0xcb   : > { %v1310_v24 = vpop.permute.xlu0 %1309  ;;  %v1748_v52 = vpop.permute.xlu1 %1747 }
  0xcc   : > { %4165 = vmatmul.mubr.msk.bf16.vlgmr.msra.gmra.mrb[0].mxu1 %vm218_vm2, %v5200_v51  ;;  %v1312_v50 = vsel %vm222_vm1, %v1310_v24, 0  ;;  %v1750_v23 = vsel %vm222_vm1, %v1748_v52, 0 }
  0xcd   : > { %4169 = vmatpush3.bf16.msra.mxu1 %v820_v53  ;;  %4170 = vmatprep.mubr.msk.bf16.mxu1 %vm4923_vm0, %v4922_v3  ;;  %v5412_v53 = vld [vmem:[%s5031_s29 + $0x2e] sm:$0x3]  ;;  %s3834_s29 = sshll.u32 %s5027_s26, 6 }
  0xce   : > { %4174 = vmatprep.subr.bf16.mxu1 %v4922_v3 }
  0xcf   : > { %v1794_v62 = vpop.permute.xlu1 %1793 }
  0xd4   : > { %4117 = vmatmul.mubr.msk.bf16.vlgmr.msra.gmra.mrb[0].mxu0 %vm218_vm2, %v5219_v55 }
  0xd5   : > { %4121 = vmatpush3.bf16.msra.mxu0 %v424_v56  ;;  %4122 = vmatprep.mubr.msk.bf16.mxu0 %vm4923_vm0, %v4922_v3  ;;  %v3644_v56 = vrot.slane %v5412_v53, %v5043_v6  ;;  %v1796_v6 = vsel %vm222_vm1, %v1794_v62, 0 }
  0xd6   : > { %4126 = vmatprep.subr.bf16.mxu0 %v4922_v3 }
  0xd7   : > { %3645 = vrot.lane.b32.xlu1 %v3644_v56, %s4924_s19  ;;  %s5600_s19 = scalar_lea.vmem [#allocation5], %s3834_s29 }
  0xd8   : > { %4171 = vmatmul.mubr.msk.bf16.vlgmr.msra.gmra.mrb[0].mxu1 %vm218_vm2, %v5219_v55 }
  0xd9   : > { %4175 = vmatpush3.bf16.msra.mxu1 %v874_v58  ;;  %4176 = vmatprep.mubr.msk.bf16.mxu1 %vm4923_vm0, %v4922_v3  ;;  %v1356_v58 = vpop.permute.xlu0 %1355 }
  0xda   : > { %4180 = vmatprep.subr.bf16.mxu1 %v4922_v3  ;;  %v1358_v61 = vsel %vm222_vm1, %v1356_v58, 0 }
  0xdb   : > { %3691 = vrot.lane.b32.xlu1 %v3644_v56, %s4925_s20  ;;  %s3753_s20 = sshll.u32 %s5600_s19, 4  ;;  %s5725_s20 = int_to_ptr.vmem [resolvable:$true] %s3753_s20 }
  0xdc   : > { %s4847_s8 = scalar_lea.vmem %s5725_s20, 1024  ;;  %p4854_p4 = scmp.lt.s32.totalorder %s5725_s20, %s4852_s16 }
  0xdd   : > { %v1456_v28 = vpop.permute.xlu0 %1455  ;;  %p4848_p1 = scmp.ne.s32.totalorder %s5725_s20, %s4847_s8  ;;  %p4855_p5 = scmp.lt.s32.totalorder %s4853_s17, %s4847_s8 }
  0xde   : > { %v1458_v2 = vsel %vm222_vm1, %v1456_v28, 0 }
  0xdf   : > { %p4849_p2 = pnand %p4848_p1, %p4992_p9  ;;  %p4856_p6 = por %p4855_p5, %p4854_p4 }
  0xe0   : > { %4123 = vmatmul.mubr.msk.bf16.vlgmr.msra.gmra.mrb[0].mxu0 %vm218_vm2, %v5248_v0 }
  0xe1   : > { %4127 = vmatpush3.bf16.msra.mxu0 %v473_v1  ;;  %4128 = vmatprep.mubr.msk.bf16.mxu0 %vm4923_vm0, %v4922_v3  ;;  %v1842_v1 = vsel %vm222_vm1, %v5116_v27, 0  ;;  %p4850_p3 = pneg %p4849_p2 }
  0xe2   : > { %4132 = vmatprep.subr.bf16.mxu0 %v4922_v3 }
  0xe3   : > { %p4857_p7 = pnand %p4856_p6, %p4850_p3 }
  0xe4   : > { %4177 = vmatmul.mubr.msk.bf16.vlgmr.msra.gmra.mrb[0].mxu1 %vm218_vm2, %v5248_v0 }
  0xe5   : > { %4181 = vmatpush3.bf16.msra.mxu1 %v920_v4  ;;  %4182 = vmatprep.mubr.msk.bf16.mxu1 %vm4923_vm0, %v4922_v3  ;;  %v1894_v4 = vpop.permute.xlu1 %1893 }
  0xe6   : > { %4186 = vmatprep.subr.bf16.mxu1 %v4922_v3  ;;  %v1896_v27 = vsel %vm222_vm1, %v1894_v4, 0 }
  0xe9   : > { %v1940_v10 = vpop.permute.xlu1 %1939 }
  0xea   : > { %v1942_v12 = vsel %vm222_vm1, %v1940_v10, 0  ;;  %v3448_v10 = vsel %vm222_vm1, %v5360_v39, 0 }
  0xec   : > { %4129 = vmatmul.mubr.msk.bf16.vlgmr.msra.gmra.mrb[0].mxu0 %vm218_vm2, %v5267_v5 }
  0xed   : > { %4133 = vmatpush3.bf16.msra.mxu0 %v522_v7  ;;  %4134 = vmatprep.mubr.msk.bf16.mxu0 %vm4923_vm0, %v4922_v3  ;;  %v1502_v7 = vpop.permute.xlu0 %1501  ;;  %v2436_v16 = vpop.permute.xlu1 %2435 }
  0xee   : > { %4138 = vmatprep.subr.bf16.mxu0 %v4922_v3 }
  0xf0   : > { %4183 = vmatmul.mubr.msk.bf16.vlgmr.msra.gmra.mrb[0].mxu1 %vm218_vm2, %v5267_v5 }
  0xf1   : > { %4187 = vmatpush3.bf16.msra.mxu1 %v966_v8  ;;  %4188 = vmatprep.mubr.msk.bf16.mxu1 %vm4923_vm0, %v4922_v3  ;;  %v1504_v8 = vsel %vm222_vm1, %v1502_v7, 0  ;;  %v1998_v13 = vpop.permute.xlu0 %1997 }
  0xf2   : > { %4192 = vmatprep.subr.bf16.mxu1 %v4922_v3 }
  0xf5   : > { %v2086_v31 = vpop.permute.xlu0 %2085 }
  0xf6   : > { %v2088_v25 = vsel %vm222_vm1, %v2086_v31, 0 }
  0xf8   : > { %4135 = vmatmul.mubr.msk.bf16.vlgmr.msra.gmra.mrb[0].mxu0 %vm218_vm2, %v5298_v14 }
  0xf9   : > { %4139 = vmatpush3.bf16.msra.mxu0 %v579_v15  ;;  %4140 = vmatprep.mubr.msk.bf16.mxu0 %vm4923_vm0, %v4922_v3  ;;  %v2000_v15 = vsel %vm222_vm1, %v1998_v13, 0  ;;  %v2186_v43 = vpop.permute.xlu0 %2185 }
  0xfa   : > { %4144 = vmatprep.subr.bf16.mxu0 %v4922_v3  ;;  %v2188_v34 = vsel %vm222_vm1, %v2186_v43, 0 }
  0xfc   : > { %4189 = vmatmul.mubr.msk.bf16.vlgmr.msra.gmra.mrb[0].mxu1 %vm218_vm2, %v5298_v14 }
  0xfd   : > { %4193 = vmatpush3.bf16.msra.mxu1 %v1020_v17  ;;  %4194 = vmatprep.mubr.msk.bf16.mxu1 %vm4923_vm0, %v4922_v3  ;;  %v2438_v17 = vsel %vm222_vm1, %v2436_v16, 0 }
  0xfe   : > { %4198 = vmatprep.subr.bf16.mxu1 %v4922_v3 }
 0x104   : > { %4141 = vmatmul.mubr.msk.bf16.vlgmr.msra.gmra.mrb[0].mxu0 %vm218_vm2, %v5317_v21 }
 0x105   : > { %4145 = vmatpush3.bf16.msra.mxu0 %v628_v22  ;;  %4146 = vmatprep.mubr.msk.bf16.mxu0 %vm4923_vm0, %v4922_v3  ;;  %v2481_v22 = vsel %vm222_vm1, %v5135_v33, 0 }
 0x106   : > { %4204 = vmatprep.subr.bf16.mxu0 %v4922_v3 }
 0x108   : > { %4195 = vmatmul.mubr.msk.bf16.vlgmr.msra.gmra.mrb[0].mxu1 %vm218_vm2, %v5317_v21 }
 0x109   : > { %4199 = vmatpush3.bf16.msra.mxu1 %v1066_v26  ;;  %4200 = vmatprep.mubr.msk.bf16.mxu1 %vm4923_vm0, %v4922_v3  ;;  %v2524_v26 = vpop.permute.xlu1 %2523 }
 0x10a   : > { %4258 = vmatprep.subr.bf16.mxu1 %v4922_v3  ;;  %v2526_v33 = vsel %vm222_vm1, %v2524_v26, 0 }
 0x110   : > { %4147 = vmatmul.mubr.msk.bf16.vlgmr.msra.gmra.mrb[0].mxu0 %vm218_vm2, %v5334_v30 }
 0x111   : > { %4205 = vmatpush3.bf16.msra.mxu0 %v1124_v32  ;;  %4206 = vmatprep.mubr.msk.bf16.mxu0 %vm4923_vm0, %v4922_v3  ;;  %v2572_v32 = vsel %vm222_vm1, %v5164_v42, 0 }
 0x112   : > { %4210 = vmatprep.subr.bf16.mxu0 %v4922_v3 }
 0x114   : > { %4201 = vmatmul.mubr.msk.bf16.vlgmr.msra.gmra.mrb[0].mxu1 %vm218_vm2, %v5334_v30 }
 0x115   : > { %4259 = vmatpush3.bf16.msra.mxu1 %v1562_v35  ;;  %4260 = vmatprep.mubr.msk.bf16.mxu1 %vm4923_vm0, %v4922_v3  ;;  %v2624_v35 = vpop.permute.xlu1 %2623 }
 0x116   : > { %4264 = vmatprep.subr.bf16.mxu1 %v4922_v3  ;;  %v2626_v42 = vsel %vm222_vm1, %v2624_v35, 0 }
 0x118   : > { %4207 = vmatmul.mubr.msk.bf16.vlgmr.msra.gmra.mrb[4].mxu0 %vm218_vm2, %v5147_v37 }
 0x119   : > { %4211 = vmatpush3.bf16.msra.mxu0 %v1167_v36  ;;  %4212 = vmatprep.mubr.msk.bf16.mxu0 %vm4923_vm0, %v4922_v3  ;;  %v2232_v36 = vpop.permute.xlu0 %2231  ;;  %v2670_v20 = vpop.permute.xlu1 %2669 }
 0x11a   : > { %4216 = vmatprep.subr.bf16.mxu0 %v4922_v3  ;;  %v2672_v41 = vsel %vm222_vm1, %v2670_v20, 0 }
 0x11c   : > { %4261 = vmatmul.mubr.msk.bf16.vlgmr.msra.gmra.mrb[4].mxu1 %vm218_vm2, %v5147_v37 }
 0x11d   : > { %4265 = vmatpush3.bf16.msra.mxu1 %v1605_v38  ;;  %4266 = vmatprep.mubr.msk.bf16.mxu1 %vm4923_vm0, %v4922_v3  ;;  %v2234_v38 = vsel %vm222_vm1, %v2232_v36, 0  ;;  %v2332_v60 = vpop.permute.xlu0 %2331 }
 0x11e   : > { %4270 = vmatprep.subr.bf16.mxu1 %v4922_v3  ;;  %v2334_v45 = vsel %vm222_vm1, %v2332_v60, 0 }
 0x124   : > { %4213 = vmatmul.mubr.msk.bf16.vlgmr.msra.gmra.mrb[4].mxu0 %vm218_vm2, %v5181_v47 }
 0x125   : > { %4217 = vmatpush3.bf16.msra.mxu0 %v1212_v44  ;;  %4218 = vmatprep.mubr.msk.bf16.mxu0 %vm4923_vm0, %v4922_v3  ;;  %v2718_v44 = vsel %vm222_vm1, %v5231_v59, 0 }
 0x126   : > { %4222 = vmatprep.subr.bf16.mxu0 %v4922_v3 }
 0x128   : > { %4267 = vmatmul.mubr.msk.bf16.vlgmr.msra.gmra.mrb[4].mxu1 %vm218_vm2, %v5181_v47 }
 0x129   : > { %4271 = vmatpush3.bf16.msra.mxu1 %v1650_v46  ;;  %4272 = vmatprep.mubr.msk.bf16.mxu1 %vm4923_vm0, %v4922_v3  ;;  %v2770_v46 = vpop.permute.xlu1 %2769 }
 0x12a   : > { %4276 = vmatprep.subr.bf16.mxu1 %v4922_v3  ;;  %v2772_v59 = vsel %vm222_vm1, %v2770_v46, 0 }
 0x12d   : > { %v2816_v24 = vpop.permute.xlu1 %2815 }
 0x130   : > { %4219 = vmatmul.mubr.msk.bf16.vlgmr.msra.gmra.mrb[4].mxu0 %vm218_vm2, %v5200_v51 }
 0x131   : > { %4223 = vmatpush3.bf16.msra.mxu0 %v1258_v48  ;;  %4224 = vmatprep.mubr.msk.bf16.mxu0 %vm4923_vm0, %v4922_v3  ;;  %v2378_v48 = vpop.permute.xlu0 %2377  ;;  %v3312_v56 = vpop.permute.xlu1 %3311 }
 0x132   : > { %4228 = vmatprep.subr.bf16.mxu0 %v4922_v3  ;;  %v3314_v57 = vsel %vm222_vm1, %v3312_v56, 0 }
 0x134   : > { %4273 = vmatmul.mubr.msk.bf16.vlgmr.msra.gmra.mrb[4].mxu1 %vm218_vm2, %v5200_v51 }
 0x135   : > { %4277 = vmatpush3.bf16.msra.mxu1 %v1696_v49  ;;  %4278 = vmatprep.mubr.msk.bf16.mxu1 %vm4923_vm0, %v4922_v3  ;;  %v2380_v49 = vsel %vm222_vm1, %v2378_v48, 0  ;;  %v2874_v52 = vpop.permute.xlu0 %2873 }
 0x136   : > { %4282 = vmatprep.subr.bf16.mxu1 %v4922_v3 }
 0x13c   : > { %4225 = vmatmul.mubr.msk.bf16.vlgmr.msra.gmra.mrb[4].mxu0 %vm218_vm2, %v5219_v55 }
 0x13d   : > { %4229 = vmatpush3.bf16.msra.mxu0 %v1312_v50  ;;  %4230 = vmatprep.mubr.msk.bf16.mxu0 %vm4923_vm0, %v4922_v3  ;;  %v2818_v50 = vsel %vm222_vm1, %v2816_v24, 0 }
 0x13e   : > { %4234 = vmatprep.subr.bf16.mxu0 %v4922_v3 }
 0x140   : > { %4279 = vmatmul.mubr.msk.bf16.vlgmr.msra.gmra.mrb[4].mxu1 %vm218_vm2, %v5219_v55 }
 0x141   : > { %4283 = vmatpush3.bf16.msra.mxu1 %v1750_v23  ;;  %4284 = vmatprep.mubr.msk.bf16.mxu1 %vm4923_vm0, %v4922_v3  ;;  %v2876_v23 = vsel %vm222_vm1, %v2874_v52, 0 }
 0x142   : > { %4288 = vmatprep.subr.bf16.mxu1 %v4922_v3 }
 0x148   : > { %4231 = vmatmul.mubr.msk.bf16.vlgmr.msra.gmra.mrb[4].mxu0 %vm218_vm2, %v5248_v0 }
 0x149   : > { %4235 = vmatpush3.bf16.msra.mxu0 %v1358_v61  ;;  %4236 = vmatprep.mubr.msk.bf16.mxu0 %vm4923_vm0, %v4922_v3 }
 0x14a   : > { %4240 = vmatprep.subr.bf16.mxu0 %v4922_v3 }
 0x14c   : > { %4285 = vmatmul.mubr.msk.bf16.vlgmr.msra.gmra.mrb[4].mxu1 %vm218_vm2, %v5248_v0 }
 0x14d   : > { %4289 = vmatpush3.bf16.msra.mxu1 %v1796_v6  ;;  %4290 = vmatprep.mubr.msk.bf16.mxu1 %vm4923_vm0, %v4922_v3 }
 0x14e   : > { %4294 = vmatprep.subr.bf16.mxu1 %v4922_v3 }
 0x154   : > { %4237 = vmatmul.mubr.msk.bf16.vlgmr.msra.gmra.mrb[4].mxu0 %vm218_vm2, %v5267_v5 }
 0x155   : > { %4241 = vmatpush3.bf16.msra.mxu0 %v1404_v63  ;;  %4242 = vmatprep.mubr.msk.bf16.mxu0 %vm4923_vm0, %v4922_v3  ;;  %v2919_v63 = vsel %vm222_vm1, %v5279_v9, 0  ;;  %v2962_v9 = vpop.permute.xlu0 %2961 }
 0x156   : > { %4246 = vmatprep.subr.bf16.mxu0 %v4922_v3  ;;  %v2964_v7 = vsel %vm222_vm1, %v2962_v9, 0 }
 0x158   : > { %4291 = vmatmul.mubr.msk.bf16.vlgmr.msra.gmra.mrb[4].mxu1 %vm218_vm2, %v5267_v5 }
 0x159   : > { %4295 = vmatpush3.bf16.msra.mxu1 %v1842_v1  ;;  %4296 = vmatprep.mubr.msk.bf16.mxu1 %vm4923_vm0, %v4922_v3 }
 0x15a   : > { %4300 = vmatprep.subr.bf16.mxu1 %v4922_v3 }
 0x160   : > { %4243 = vmatmul.mubr.msk.bf16.vlgmr.msra.gmra.mrb[4].mxu0 %vm218_vm2, %v5298_v14 }
 0x161   : > { %4247 = vmatpush3.bf16.msra.mxu0 %v1458_v2  ;;  %4248 = vmatprep.mubr.msk.bf16.mxu0 %vm4923_vm0, %v4922_v3 }
 0x162   : > { %4252 = vmatprep.subr.bf16.mxu0 %v4922_v3 }
 0x164   : > { %4297 = vmatmul.mubr.msk.bf16.vlgmr.msra.gmra.mrb[4].mxu1 %vm218_vm2, %v5298_v14 }
 0x165   : > { %4301 = vmatpush3.bf16.msra.mxu1 %v1896_v27  ;;  %4302 = vmatprep.mubr.msk.bf16.mxu1 %vm4923_vm0, %v4922_v3  ;;  %v3357_v27 = vsel %vm222_vm1, %v5286_v11, 0 }
 0x166   : > { %4306 = vmatprep.subr.bf16.mxu1 %v4922_v3 }
 0x16c   : > { %4249 = vmatmul.mubr.msk.bf16.vlgmr.msra.gmra.mrb[4].mxu0 %vm218_vm2, %v5317_v21 }
 0x16d   : > { %4253 = vmatpush3.bf16.msra.mxu0 %v1504_v8  ;;  %4254 = vmatprep.mubr.msk.bf16.mxu0 %vm4923_vm0, %v4922_v3  ;;  %v3400_v8 = vpop.permute.xlu1 %3399 }
 0x16e   : > { %4312 = vmatprep.subr.bf16.mxu0 %v4922_v3  ;;  %v3402_v11 = vsel %vm222_vm1, %v3400_v8, 0 }
 0x170   : > { %4303 = vmatmul.mubr.msk.bf16.vlgmr.msra.gmra.mrb[4].mxu1 %vm218_vm2, %v5317_v21 }
 0x171   : > { %4307 = vmatpush3.bf16.msra.mxu1 %v1942_v12  ;;  %4308 = vmatprep.mubr.msk.bf16.mxu1 %vm4923_vm0, %v4922_v3  ;;  %v3500_v12 = vpop.permute.xlu1 %3499 }
 0x172   : > { %4366 = vmatprep.subr.bf16.mxu1 %v4922_v3  ;;  %v3502_v39 = vsel %vm222_vm1, %v3500_v12, 0 }
 0x178   : > { %4255 = vmatmul.mubr.msk.bf16.vlgmr.msra.gmra.mrb[4].mxu0 %vm218_vm2, %v5334_v30 }
 0x179   : > { %4313 = vmatpush3.bf16.msra.mxu0 %v2000_v15  ;;  %4314 = vmatprep.mubr.msk.bf16.mxu0 %vm4923_vm0, %v4922_v3  ;;  %v3546_v15 = vpop.permute.xlu1 %3545 }
 0x17a   : > { %4318 = vmatprep.subr.bf16.mxu0 %v4922_v3  ;;  %v3548_v16 = vsel %vm222_vm1, %v3546_v15, 0 }
 0x17c   : > { %4309 = vmatmul.mubr.msk.bf16.vlgmr.msra.gmra.mrb[4].mxu1 %vm218_vm2, %v5334_v30 }
 0x17d   : > { %4367 = vmatpush3.bf16.msra.mxu1 %v2438_v17  ;;  %4368 = vmatprep.mubr.msk.bf16.mxu1 %vm4923_vm0, %v4922_v3  ;;  %v3594_v17 = vsel %vm222_vm1, %v5412_v53, 0 }
 0x17e   : > { %4372 = vmatprep.subr.bf16.mxu1 %v4922_v3 }
 0x180   : > { %4315 = vmatmul.mubr.msk.bf16.vlgmr.msra.gmra.mrb[8].mxu0 %vm218_vm2, %v5147_v37 }
 0x181   : > { %4319 = vmatpush3.bf16.msra.mxu0 %v2043_v18  ;;  %4320 = vmatprep.mubr.msk.bf16.mxu0 %vm4923_vm0, %v4922_v3  ;;  %v3646_v18 = vpop.permute.xlu1 %3645 }
 0x182   : > { %4324 = vmatprep.subr.bf16.mxu0 %v4922_v3  ;;  %v3648_v53 = vsel %vm222_vm1, %v3646_v18, 0 }
 0x184   : > { %4369 = vmatmul.mubr.msk.bf16.vlgmr.msra.gmra.mrb[8].mxu1 %vm218_vm2, %v5147_v37 }
 0x185   : > { %4373 = vmatpush3.bf16.msra.mxu1 %v2481_v22  ;;  %4374 = vmatprep.mubr.msk.bf16.mxu1 %vm4923_vm0, %v4922_v3  ;;  %v3692_v31 = vpop.permute.xlu1 %3691 }
 0x186   : > { %4378 = vmatprep.subr.bf16.mxu1 %v4922_v3 }
 0x18c   : > { %4321 = vmatmul.mubr.msk.bf16.vlgmr.msra.gmra.mrb[8].mxu0 %vm218_vm2, %v5181_v47 }
 0x18d   : > { %4325 = vmatpush3.bf16.msra.mxu0 %v2088_v25  ;;  %4326 = vmatprep.mubr.msk.bf16.mxu0 %vm4923_vm0, %v4922_v3 }
 0x18e   : > { %4330 = vmatprep.subr.bf16.mxu0 %v4922_v3 }
 0x190   : > { %4375 = vmatmul.mubr.msk.bf16.vlgmr.msra.gmra.mrb[8].mxu1 %vm218_vm2, %v5181_v47 }
 0x191   : > { %4379 = vmatpush3.bf16.msra.mxu1 %v2526_v33  ;;  %4380 = vmatprep.mubr.msk.bf16.mxu1 %vm4923_vm0, %v4922_v3 }
 0x192   : > { %4384 = vmatprep.subr.bf16.mxu1 %v4922_v3 }
 0x198   : > { %4327 = vmatmul.mubr.msk.bf16.vlgmr.msra.gmra.mrb[8].mxu0 %vm218_vm2, %v5200_v51 }
 0x199   : > { %4331 = vmatpush3.bf16.msra.mxu0 %v2134_v29  ;;  %4332 = vmatprep.mubr.msk.bf16.mxu0 %vm4923_vm0, %v4922_v3 }
 0x19a   : > { %4336 = vmatprep.subr.bf16.mxu0 %v4922_v3 }
 0x19c   : > { %4381 = vmatmul.mubr.msk.bf16.vlgmr.msra.gmra.mrb[8].mxu1 %vm218_vm2, %v5200_v51 }
 0x19d   : > { %4385 = vmatpush3.bf16.msra.mxu1 %v2572_v32  ;;  %4386 = vmatprep.mubr.msk.bf16.mxu1 %vm4923_vm0, %v4922_v3 }
 0x19e   : > { %4390 = vmatprep.subr.bf16.mxu1 %v4922_v3 }
 0x1a4   : > { %4333 = vmatmul.mubr.msk.bf16.vlgmr.msra.gmra.mrb[8].mxu0 %vm218_vm2, %v5219_v55 }
 0x1a5   : > { %4337 = vmatpush3.bf16.msra.mxu0 %v2188_v34  ;;  %4338 = vmatprep.mubr.msk.bf16.mxu0 %vm4923_vm0, %v4922_v3 }
 0x1a6   : > { %4342 = vmatprep.subr.bf16.mxu0 %v4922_v3 }
 0x1a8   : > { %4387 = vmatmul.mubr.msk.bf16.vlgmr.msra.gmra.mrb[8].mxu1 %vm218_vm2, %v5219_v55 }
 0x1a9   : > { %4391 = vmatpush3.bf16.msra.mxu1 %v2626_v42  ;;  %4392 = vmatprep.mubr.msk.bf16.mxu1 %vm4923_vm0, %v4922_v3 }
 0x1aa   : > { %4396 = vmatprep.subr.bf16.mxu1 %v4922_v3 }
 0x1b0   : > { %4339 = vmatmul.mubr.msk.bf16.vlgmr.msra.gmra.mrb[8].mxu0 %vm218_vm2, %v5248_v0 }
 0x1b1   : > { %4343 = vmatpush3.bf16.msra.mxu0 %v2234_v38  ;;  %4344 = vmatprep.mubr.msk.bf16.mxu0 %vm4923_vm0, %v4922_v3 }
 0x1b2   : > { %4348 = vmatprep.subr.bf16.mxu0 %v4922_v3 }
 0x1b4   : > { %4393 = vmatmul.mubr.msk.bf16.vlgmr.msra.gmra.mrb[8].mxu1 %vm218_vm2, %v5248_v0 }
 0x1b5   : > { %4397 = vmatpush3.bf16.msra.mxu1 %v2672_v41  ;;  %4398 = vmatprep.mubr.msk.bf16.mxu1 %vm4923_vm0, %v4922_v3 }
 0x1b6   : > { %4402 = vmatprep.subr.bf16.mxu1 %v4922_v3 }
 0x1bc   : > { %4345 = vmatmul.mubr.msk.bf16.vlgmr.msra.gmra.mrb[8].mxu0 %vm218_vm2, %v5267_v5 }
 0x1bd   : > { %4349 = vmatpush3.bf16.msra.mxu0 %v2280_v19  ;;  %4350 = vmatprep.mubr.msk.bf16.mxu0 %vm4923_vm0, %v4922_v3 }
 0x1be   : > { %4354 = vmatprep.subr.bf16.mxu0 %v4922_v3 }
 0x1c0   : > { %4399 = vmatmul.mubr.msk.bf16.vlgmr.msra.gmra.mrb[8].mxu1 %vm218_vm2, %v5267_v5 }
 0x1c1   : > { %4403 = vmatpush3.bf16.msra.mxu1 %v2718_v44  ;;  %4404 = vmatprep.mubr.msk.bf16.mxu1 %vm4923_vm0, %v4922_v3 }
 0x1c2   : > { %4408 = vmatprep.subr.bf16.mxu1 %v4922_v3 }
 0x1c8   : > { %4351 = vmatmul.mubr.msk.bf16.vlgmr.msra.gmra.mrb[8].mxu0 %vm218_vm2, %v5298_v14 }
 0x1c9   : > { %4355 = vmatpush3.bf16.msra.mxu0 %v2334_v45  ;;  %4356 = vmatprep.mubr.msk.bf16.mxu0 %vm4923_vm0, %v4922_v3 }
 0x1ca   : > { %4360 = vmatprep.subr.bf16.mxu0 %v4922_v3 }
 0x1cc   : > { %4405 = vmatmul.mubr.msk.bf16.vlgmr.msra.gmra.mrb[8].mxu1 %vm218_vm2, %v5298_v14 }
 0x1cd   : > { %4409 = vmatpush3.bf16.msra.mxu1 %v2772_v59  ;;  %4410 = vmatprep.mubr.msk.bf16.mxu1 %vm4923_vm0, %v4922_v3 }
 0x1ce   : > { %4414 = vmatprep.subr.bf16.mxu1 %v4922_v3 }
 0x1d4   : > { %4357 = vmatmul.mubr.msk.bf16.vlgmr.msra.gmra.mrb[8].mxu0 %vm218_vm2, %v5317_v21 }
 0x1d5   : > { %4361 = vmatpush3.bf16.msra.mxu0 %v2380_v49  ;;  %4362 = vmatprep.mubr.msk.bf16.mxu0 %vm4923_vm0, %v4922_v3 }
 0x1d6   : > { %4420 = vmatprep.subr.bf16.mxu0 %v4922_v3 }
 0x1d8   : > { %4411 = vmatmul.mubr.msk.bf16.vlgmr.msra.gmra.mrb[8].mxu1 %vm218_vm2, %v5317_v21 }
 0x1d9   : > { %4415 = vmatpush3.bf16.msra.mxu1 %v2818_v50  ;;  %4416 = vmatprep.mubr.msk.bf16.mxu1 %vm4923_vm0, %v4922_v3 }
 0x1da   : > { %4474 = vmatprep.subr.bf16.mxu1 %v4922_v3 }
 0x1e0   : > { %4363 = vmatmul.mubr.msk.bf16.vlgmr.msra.gmra.mrb[8].mxu0 %vm218_vm2, %v5334_v30 }
 0x1e1   : > { %4421 = vmatpush3.bf16.msra.mxu0 %v2876_v23  ;;  %4422 = vmatprep.mubr.msk.bf16.mxu0 %vm4923_vm0, %v4922_v3 }
 0x1e2   : > { %4426 = vmatprep.subr.bf16.mxu0 %v4922_v3 }
 0x1e3   : > { %v664_v58 = vpop.f32.mrb[0].mxu0 }
 0x1e4   : > { %672 = vst.msk [vmem:[%s5600_s19] sm:$0xff] %vm671_vm3, %v664_v58  ;;  %v4148_v61 = vpop.f32.mrb[1].mxu0  ;;  %4417 = vmatmul.mubr.msk.bf16.vlgmr.msra.gmra.mrb[8].mxu1 %vm218_vm2, %v5334_v30 }
 0x1e5   : > { %v667_v62 = vpop.f32.mrb[2].mxu0  ;;  %4475 = vmatpush3.bf16.msra.mxu1 %v3314_v57  ;;  %4476 = vmatprep.mubr.msk.bf16.mxu1 %vm4923_vm0, %v4922_v3 }
 0x1e6   : > { %v4149_v6 = vpop.f32.mrb[3].mxu0  ;;  %4480 = vmatprep.subr.bf16.mxu1 %v4922_v3 }
 0x1e7   : > { %v1102_v1 = vpop.f32.mrb[0].mxu1 }
 0x1e8   : > { %3866 = vst.msk [vmem:[%s5600_s19 + $0x8] sm:$0xff] %vm671_vm3, %v1102_v1  ;;  %v4202_v28 = vpop.f32.mrb[1].mxu1  ;;  %4423 = vmatmul.mubr.msk.bf16.vlgmr.msra.gmra.mrb[12].mxu0 %vm218_vm2, %v5147_v37 }
 0x1e9   : > { %v1105_v2 = vpop.f32.mrb[2].mxu1  ;;  %4427 = vmatpush3.bf16.msra.mxu0 %v2919_v63  ;;  %4428 = vmatprep.mubr.msk.bf16.mxu0 %vm4923_vm0, %v4922_v3 }
 0x1ea   : > { %v4203_v4 = vpop.f32.mrb[3].mxu1  ;;  %4432 = vmatprep.subr.bf16.mxu0 %v4922_v3 }
 0x1ec   : > { %4477 = vmatmul.mubr.msk.bf16.vlgmr.msra.gmra.mrb[12].mxu1 %vm218_vm2, %v5147_v37  ;;  %v3010_v37 = vsel %vm222_vm1, %v5363_v40, 0 }
 0x1ed   : > { %4481 = vmatpush3.bf16.msra.mxu1 %v3357_v27  ;;  %4482 = vmatprep.mubr.msk.bf16.mxu1 %vm4923_vm0, %v4922_v3 }
 0x1ee   : > { %4486 = vmatprep.subr.bf16.mxu1 %v4922_v3 }
 0x1f4   : > { %4429 = vmatmul.mubr.msk.bf16.vlgmr.msra.gmra.mrb[12].mxu0 %vm218_vm2, %v5181_v47 }
 0x1f5   : > { %4433 = vmatpush3.bf16.msra.mxu0 %v2964_v7  ;;  %4434 = vmatprep.mubr.msk.bf16.mxu0 %vm4923_vm0, %v4922_v3 }
 0x1f6   : > { %4438 = vmatprep.subr.bf16.mxu0 %v4922_v3 }
 0x1f8   : > { %4483 = vmatmul.mubr.msk.bf16.vlgmr.msra.gmra.mrb[12].mxu1 %vm218_vm2, %v5181_v47  ;;  %v3062_v47 = vpop.permute.xlu0 %3061 }
 0x1f9   : > { %4487 = vmatpush3.bf16.msra.mxu1 %v3402_v11  ;;  %4488 = vmatprep.mubr.msk.bf16.mxu1 %vm4923_vm0, %v4922_v3  ;;  %v3064_v40 = vsel %vm222_vm1, %v3062_v47, 0 }
 0x1fa   : > { %4492 = vmatprep.subr.bf16.mxu1 %v4922_v3 }
 0x200   : > { %4435 = vmatmul.mubr.msk.bf16.vlgmr.msra.gmra.mrb[12].mxu0 %vm218_vm2, %v5200_v51 }
 0x201   : > { %4439 = vmatpush3.bf16.msra.mxu0 %v3010_v37  ;;  %4440 = vmatprep.mubr.msk.bf16.mxu0 %vm4923_vm0, %v4922_v3 }
 0x202   : > { %4444 = vmatprep.subr.bf16.mxu0 %v4922_v3 }
 0x204   : > { %4489 = vmatmul.mubr.msk.bf16.vlgmr.msra.gmra.mrb[12].mxu1 %vm218_vm2, %v5200_v51  ;;  %v3108_v51 = vpop.permute.xlu0 %3107 }
 0x205   : > { %4493 = vmatpush3.bf16.msra.mxu1 %v3448_v10  ;;  %4494 = vmatprep.mubr.msk.bf16.mxu1 %vm4923_vm0, %v4922_v3  ;;  %v3110_v13 = vsel %vm222_vm1, %v3108_v51, 0 }
 0x206   : > { %4498 = vmatprep.subr.bf16.mxu1 %v4922_v3 }
 0x20c   : > { %4441 = vmatmul.mubr.msk.bf16.vlgmr.msra.gmra.mrb[12].mxu0 %vm218_vm2, %v5219_v55 }
 0x20d   : > { %4445 = vmatpush3.bf16.msra.mxu0 %v3064_v40  ;;  %4446 = vmatprep.mubr.msk.bf16.mxu0 %vm4923_vm0, %v4922_v3 }
 0x20e   : > { %4450 = vmatprep.subr.bf16.mxu0 %v4922_v3 }
 0x210   : > { %4495 = vmatmul.mubr.msk.bf16.vlgmr.msra.gmra.mrb[12].mxu1 %vm218_vm2, %v5219_v55  ;;  %v3156_v55 = vsel %vm222_vm1, %v5415_v54, 0 }
 0x211   : > { %4499 = vmatpush3.bf16.msra.mxu1 %v3502_v39  ;;  %4500 = vmatprep.mubr.msk.bf16.mxu1 %vm4923_vm0, %v4922_v3 }
 0x212   : > { %4504 = vmatprep.subr.bf16.mxu1 %v4922_v3 }
 0x218   : > { %4447 = vmatmul.mubr.msk.bf16.vlgmr.msra.gmra.mrb[12].mxu0 %vm218_vm2, %v5248_v0 }
 0x219   : > { %4451 = vmatpush3.bf16.msra.mxu0 %v3110_v13  ;;  %4452 = vmatprep.mubr.msk.bf16.mxu0 %vm4923_vm0, %v4922_v3 }
 0x21a   : > { %4456 = vmatprep.subr.bf16.mxu0 %v4922_v3 }
 0x21c   : > { %4501 = vmatmul.mubr.msk.bf16.vlgmr.msra.gmra.mrb[12].mxu1 %vm218_vm2, %v5248_v0  ;;  %v3208_v0 = vpop.permute.xlu0 %3207 }
 0x21d   : > { %4505 = vmatpush3.bf16.msra.mxu1 %v3548_v16  ;;  %4506 = vmatprep.mubr.msk.bf16.mxu1 %vm4923_vm0, %v4922_v3  ;;  %v3210_v54 = vsel %vm222_vm1, %v3208_v0, 0 }
 0x21e   : > { %4510 = vmatprep.subr.bf16.mxu1 %v4922_v3 }
 0x224   : > { %4453 = vmatmul.mubr.msk.bf16.vlgmr.msra.gmra.mrb[12].mxu0 %vm218_vm2, %v5267_v5 }
 0x225   : > { %4457 = vmatpush3.bf16.msra.mxu0 %v3156_v55  ;;  %4458 = vmatprep.mubr.msk.bf16.mxu0 %vm4923_vm0, %v4922_v3 }
 0x226   : > { %4462 = vmatprep.subr.bf16.mxu0 %v4922_v3 }
 0x228   : > { %4507 = vmatmul.mubr.msk.bf16.vlgmr.msra.gmra.mrb[12].mxu1 %vm218_vm2, %v5267_v5  ;;  %v3254_v5 = vpop.permute.xlu0 %3253 }
 0x229   : > { %4511 = vmatpush3.bf16.msra.mxu1 %v3594_v17  ;;  %4512 = vmatprep.mubr.msk.bf16.mxu1 %vm4923_vm0, %v4922_v3  ;;  %v3256_v22 = vsel %vm222_vm1, %v3254_v5, 0 }
 0x22a   : > { %4516 = vmatprep.subr.bf16.mxu1 %v4922_v3 }
 0x230   : > { %4459 = vmatmul.mubr.msk.bf16.vlgmr.msra.gmra.mrb[12].mxu0 %vm218_vm2, %v5298_v14 }
 0x231   : > { %4463 = vmatpush3.bf16.msra.mxu0 %v3210_v54  ;;  %4464 = vmatprep.mubr.msk.bf16.mxu0 %vm4923_vm0, %v4922_v3 }
 0x232   : > { %4468 = vmatprep.subr.bf16.mxu0 %v4922_v3 }
 0x234   : > { %4513 = vmatmul.mubr.msk.bf16.vlgmr.msra.gmra.mrb[12].mxu1 %vm218_vm2, %v5298_v14  ;;  %v3694_v14 = vsel %vm222_vm1, %v3692_v31, 0 }
 0x235   : > { %4517 = vmatpush3.bf16.msra.mxu1 %v3648_v53  ;;  %4518 = vmatprep.mubr.msk.bf16.mxu1 %vm4923_vm0, %v4922_v3 }
 0x236   : > { %4522 = vmatprep.subr.bf16.mxu1 %v4922_v3 }
 0x23c   : > { %4465 = vmatmul.mubr.msk.bf16.vlgmr.msra.gmra.mrb[12].mxu0 %vm218_vm2, %v5317_v21 }
 0x23d   : > { %4469 = vmatpush3.bf16.msra.mxu0 %v3256_v22  ;;  %4470 = vmatprep.mubr.msk.bf16.mxu0 %vm4923_vm0, %v4922_v3 }
 0x240   : > { %4519 = vmatmul.mubr.msk.bf16.vlgmr.msra.gmra.mrb[12].mxu1 %vm218_vm2, %v5317_v21 }
 0x241   : > { %4523 = vmatpush3.bf16.msra.mxu1 %v3694_v14  ;;  %4524 = vmatprep.mubr.msk.bf16.mxu1 %vm4923_vm0, %v4922_v3 }
 0x248   : > { %4471 = vmatmul.mubr.msk.bf16.vlgmr.msra.gmra.mrb[12].mxu0 %vm218_vm2, %v5334_v30 }
 0x24b   : > { %v1540_v25 = vpop.f32.mrb[4].mxu0 }
 0x24c   : > { %3879 = vst.msk [vmem:[%s5600_s19 + $0x10] sm:$0xff] %vm671_vm3, %v1540_v25  ;;  %v4256_v26 = vpop.f32.mrb[5].mxu0  ;;  %4525 = vmatmul.mubr.msk.bf16.vlgmr.msra.gmra.mrb[12].mxu1 %vm218_vm2, %v5334_v30 }
 0x24d   : > { %v1543_v33 = vpop.f32.mrb[6].mxu0 }
 0x24e   : > { %v4257_v29 = vpop.f32.mrb[7].mxu0 }
 0x24f   : > { %v1978_v21 = vpop.f32.mrb[4].mxu1 }
 0x250   : > { %3892 = vst.msk [vmem:[%s5600_s19 + $0x18] sm:$0xff] %vm671_vm3, %v1978_v21  ;;  %v4310_v32 = vpop.f32.mrb[5].mxu1 }
 0x251   : > { %v1981_v3 = vpop.f32.mrb[6].mxu1 }
 0x252   : > { %v4311_v43 = vpop.f32.mrb[7].mxu1 }
 0x2b3   : > { %v2416_v34 = vpop.f32.mrb[8].mxu0 }
 0x2b4   : > { %3905 = vst.msk [vmem:[%s5600_s19 + $0x20] sm:$0xff] %vm671_vm3, %v2416_v34  ;;  %v4364_v35 = vpop.f32.mrb[9].mxu0 }
 0x2b5   : > { %v2419_v42 = vpop.f32.mrb[10].mxu0 }
 0x2b6   : > { %v4365_v36 = vpop.f32.mrb[11].mxu0 }
 0x2b7   : > { %v2854_v38 = vpop.f32.mrb[8].mxu1 }
 0x2b8   : > { %3918 = vst.msk [vmem:[%s5600_s19 + $0x28] sm:$0xff] %vm671_vm3, %v2854_v38  ;;  %v4418_v30 = vpop.f32.mrb[9].mxu1 }
 0x2b9   : > { %v2857_v20 = vpop.f32.mrb[10].mxu1 }
 0x2ba   : > { %v4419_v41 = vpop.f32.mrb[11].mxu1 }
 0x31b   : > { %v3292_v19 = vpop.f32.mrb[12].mxu0 }
 0x31c   : > { %3931 = vst.msk [vmem:[%s5600_s19 + $0x30] sm:$0xff] %vm671_vm3, %v3292_v19  ;;  %v4472_v44 = vpop.f32.mrb[13].mxu0 }
 0x31d   : > { %v3295_v60 = vpop.f32.mrb[14].mxu0 }
 0x31e   : > { %v4473_v45 = vpop.f32.mrb[15].mxu0 }
 0x31f   : > { %v3730_v46 = vpop.f32.mrb[12].mxu1 }
 0x320   : > { %3944 = vst.msk [vmem:[%s5600_s19 + $0x38] sm:$0xff] %vm671_vm3, %v3730_v46  ;;  %v4526_v59 = vpop.f32.mrb[13].mxu1 }
 0x321   : > { %v3733_v48 = vpop.f32.mrb[14].mxu1 }
 0x322   : > { %4860 = shalt.err (!%p4857_p7)
}
 0x323   : > { %s4861_s24 = scalar_lea.hbm %s5732_s7, 1024  ;;  %s4865_s28 = scalar_lea.hbm %s5780_s2, 2048 }
 0x324   : > { %p4862_p8 = scmp.ne.s32.totalorder %s5732_s7, %s4861_s24  ;;  %p4866_p0 = scmp.lt.u32.totalorder %s5732_s7, %s5780_s2 }
 0x325   : > { %p4867_p1 = scmp.lt.u32.totalorder %s4865_s28, %s4861_s24  ;;  %p4869_p3 = scmp.lt.u32.totalorder %s4861_s24, %s5732_s7 }
 0x326   : > { %p4863_p12 = pnand %p4862_p8, %p4992_p9 }
 0x327   : > { %p4868_p2 = por %p4867_p1, %p4866_p0 }
 0x328   : > { %p4864_p13 = pneg %p4863_p12 }
 0x329   : > { %p4870_p4 = por %p4869_p3, %p4868_p2 }
 0x32b   : > { %p4871_p5 = pnand %p4870_p4, %p4864_p13 }
 0x32d   : > { %4874 = shalt.err (!%p4871_p5)
}
 0x32e   : > { %s4927_s3 = smov 128   ;;  %s4928_s29 = smov 8   ;;  %v4527_v49 = vpop.f32.mrb[15].mxu1 }
 0x32f   : > { %4795 = dma.vmem_to_hbm [thread:$0]  (%p4992_p9), %s5725_s20, 1024, %s5732_s7, %s3740_s13, %s4927_s3, %s4927_s3, %s4928_s29  }
 0x330 PF: > { %s3768_s19 = sand.u32 1, %s4901_s9   ;;  %p4798_p6 = pnand %p3828_p11, %p4996_p10 }
 0x331   : > { %s3769_s4 = scalar_lea.sflag [#allocation4], %s3768_s19 }
 0x332   : > { %4896 = dma.done.wait (!%p4798_p6), %s3769_s4, 1024  }
 0x333   : > { %4898 = vsyncadd (!%p4798_p6), %s3769_s4, 4294966272  ;;  %p15_p7 = scmp.ge.s32.totalorder %s4969_s15, 4   ;;  %s5785_s9 = smov %s4905_s10 }
 0x334   : > { %s5786_s10 = smov %s4909_s11  ;;  %s5787_s11 = smov %s4981_s18 }
 0x335   : > { %s5788_s12 = smov %s4969_s15  ;;  %17 = sbr.rel (!%p15_p7) target bundleno = 5 (0x5), region = 116 }
 0x33c   :  { %3774 = vsyncpa [#allocation3], 1 }
 0x33d   :  { %3776 = vsyncpa [#allocation3 + $0x1], 1 }
 0x33e   :  { %3777 = vsyncpa [#allocation4], 1 }
 0x33f   :  { %3779 = vsyncpa [#allocation4 + $0x1], 1 }

</bundles_post_ra>
